<compile_context>
chip_gen: v5e
topology: v5e:2x2
jax: 0.10.0
libtpu: 0.0.40
codegen_flags: <defaults>
</compile_context>

<pallas_src>
import functools

import jax
import jax.numpy as jnp
from jax.experimental import pallas as pl
from jax.experimental.pallas import tpu as pltpu

_SLOPE = 0.2      # LeakyReLU(0.2) per the PyTorch module
_EPS = 1e-5       # InstanceNorm2d default eps


# ----------------------------------------------------------------------------
# Shared in-kernel pieces
# ----------------------------------------------------------------------------
def _leaky(x):
    return jnp.where(x >= 0, x, _SLOPE * x)


def _backbone(x_bf16, w1_ref, b1_ref, w2_ref, b2_ref):
    """conv1x1 -> LeakyReLU(0.2) -> conv1x1.  x:(Cin,T) bf16 -> h2:(C2,T) f32."""
    h1 = jnp.dot(w1_ref[...], x_bf16,
                 preferred_element_type=jnp.float32) + b1_ref[...]      # (C1, T)
    h1 = _leaky(h1)
    h2 = jnp.dot(w2_ref[...], h1.astype(jnp.bfloat16),
                 preferred_element_type=jnp.float32) + b2_ref[...]      # (C2, T)
    return h2


def _norm_head(h2, ssum, ssq, w3_ref, b3_ref, inv_hw):
    """InstanceNorm (biased var) -> LeakyReLU -> 1x1 head -> exact sigmoid."""
    mean = ssum * inv_hw                                                # (C2, 1)
    var = ssq * inv_hw - mean * mean                                    # biased
    inv_std = jax.lax.rsqrt(var + _EPS)
    h3 = _leaky((h2 - mean) * inv_std)
    logits = jnp.dot(w3_ref[...], h3.astype(jnp.bfloat16),
                     preferred_element_type=jnp.float32) + b3_ref[...]  # (1, T)
    return 1.0 / (1.0 + jnp.exp(-logits))   # exact sigmoid, stays in [0, 1]


# ----------------------------------------------------------------------------
# Fully-fused kernel: whole H*W plane in one tile (no intermediate HBM at all)
# ----------------------------------------------------------------------------
def _fused_kernel(x_ref, w1_ref, b1_ref, w2_ref, b2_ref, w3_ref, b3_ref,
                  o_ref, *, hw, padded):
    h2 = _backbone(x_ref[0], w1_ref, b1_ref, w2_ref, b2_ref)            # (C2, HWp)
    if padded:
        lane = jax.lax.broadcasted_iota(jnp.int32, h2.shape, 1)
        m = (lane < hw).astype(jnp.float32)
        h2m = h2 * m
        ssum = jnp.sum(h2m, axis=-1, keepdims=True)
        ssq = jnp.sum(h2m * h2, axis=-1, keepdims=True)
    else:
        ssum = jnp.sum(h2, axis=-1, keepdims=True)
        ssq = jnp.sum(h2 * h2, axis=-1, keepdims=True)
    o_ref[0] = _norm_head(h2, ssum, ssq, w3_ref, b3_ref, 1.0 / float(hw))


# ----------------------------------------------------------------------------
# Two-pass kernels (H*W does not fit one tile).
# Pass 1: per-channel sum / sum-of-squares only (no activation writeback).
# Pass 2: recompute conv1+LeakyReLU+conv2, then InstanceNorm + head.
# ----------------------------------------------------------------------------
def _stats_kernel(x_ref, w1_ref, b1_ref, w2_ref, b2_ref, ssum_ref, ssq_ref, *,
                  hw, t_hw, n_t_inner, padded):
    h2 = _backbone(x_ref[0], w1_ref, b1_ref, w2_ref, b2_ref)            # (C2, T)
    if padded:
        tile = pl.program_id(1) * n_t_inner + pl.program_id(2)
        lane = jax.lax.broadcasted_iota(jnp.int32, h2.shape, 1) + tile * t_hw
        m = (lane < hw).astype(jnp.float32)
        h2m = h2 * m
        local_sum = jnp.sum(h2m, axis=-1, keepdims=True)                # (C2, 1)
        local_sq = jnp.sum(h2m * h2, axis=-1, keepdims=True)
    else:
        local_sum = jnp.sum(h2, axis=-1, keepdims=True)
        local_sq = jnp.sum(h2 * h2, axis=-1, keepdims=True)

    t = pl.program_id(2)   # inner spatial axis is the reduction ("arbitrary") axis

    @pl.when(t == 0)
    def _():
        ssum_ref[0, 0] = local_sum
        ssq_ref[0, 0] = local_sq

    @pl.when(t > 0)
    def _():
        ssum_ref[0, 0] += local_sum
        ssq_ref[0, 0] += local_sq


def _head_kernel(x_ref, w1_ref, b1_ref, w2_ref, b2_ref, ssum_ref, ssq_ref,
                 w3_ref, b3_ref, o_ref, *, inv_hw):
    h2 = _backbone(x_ref[0], w1_ref, b1_ref, w2_ref, b2_ref)            # recompute
    o_ref[0] = _norm_head(h2, ssum_ref[0], ssq_ref[0], w3_ref, b3_ref, inv_hw)


# ----------------------------------------------------------------------------
# Host-side wrapper
# ----------------------------------------------------------------------------
def _pick_hw_tile(hw_p, max_tile):
    """Largest 128-multiple divisor of hw_p (itself a multiple of 128) <= max_tile."""
    if hw_p <= max_tile:
        return hw_p
    t = (max_tile // 128) * 128
    while t >= 128:
        if hw_p % t == 0:
            return t
        t -= 128
    return 128  # unreachable: 128 always divides hw_p


def pixel_discriminator(x, params, *, max_tile=8192):
    """x: (B, Cin, H, W) NCHW float32.  Returns (B, 1, H, W) float32."""
    B, cin, H, W = x.shape
    hw = H * W
    hw_p = ((hw + 127) // 128) * 128          # pad pixels to a lane multiple
    padded = hw_p != hw

    # 1x1 conv weights (Cout, Cin, 1, 1) -> (Cout, Cin); bf16 for the MXU.
    w1 = params["w1"].reshape(params["w1"].shape[0], cin).astype(jnp.bfloat16)
    c1 = w1.shape[0]
    w2 = params["w2"].reshape(params["w2"].shape[0], c1).astype(jnp.bfloat16)
    c2 = w2.shape[0]
    w3 = params["w3"].reshape(1, c2).astype(jnp.bfloat16)
    b1 = params["b1"].reshape(c1, 1).astype(jnp.float32)
    b2 = params["b2"].reshape(c2, 1).astype(jnp.float32)
    b3 = params["b3"].reshape(1, 1).astype(jnp.float32)

    # Channels-major, bf16 on the host (halves input DMA; MXU consumes bf16).
    x_flat = x.reshape(B, cin, hw).astype(jnp.bfloat16)
    if padded:
        x_flat = jnp.pad(x_flat, ((0, 0), (0, 0), (0, hw_p - hw)))

    t_hw = _pick_hw_tile(hw_p, max_tile)
    n_t = hw_p // t_hw
    inv_hw = 1.0 / float(hw)
    vmem_limit = 48 * 1024 * 1024   # below v7x's 64 MiB physical VMEM; ample on v5e/v6e

    if n_t == 1:
        # Fully fused single launch: conv1 -> conv2 -> stats -> norm -> head.
        out = pl.pallas_call(
            functools.partial(_fused_kernel, hw=hw, padded=padded),
            grid=(B,),
            in_specs=[
                pl.BlockSpec((1, cin, hw_p), lambda b: (b, 0, 0)),
                pl.BlockSpec((c1, cin), lambda b: (0, 0)),
                pl.BlockSpec((c1, 1), lambda b: (0, 0)),
                pl.BlockSpec((c2, c1), lambda b: (0, 0)),
                pl.BlockSpec((c2, 1), lambda b: (0, 0)),
                pl.BlockSpec((1, c2), lambda b: (0, 0)),
                pl.BlockSpec((1, 1), lambda b: (0, 0)),
            ],
            out_specs=pl.BlockSpec((1, 1, hw_p), lambda b: (b, 0, 0)),
            out_shape=jax.ShapeDtypeStruct((B, 1, hw_p), jnp.float32),
            compiler_params=pltpu.CompilerParams(
                dimension_semantics=("parallel",),
                vmem_limit_bytes=vmem_limit),
        )(x_flat, w1, b1, w2, b2, w3, b3)
    else:
        # Split the spatial tiles into 2 parallel "super-chunks" so both v7x
        # TensorCores get work even when B == 1 (the inner spatial axis must be
        # "arbitrary" for the resident stats accumulator).
        n_chunks = 2 if n_t % 2 == 0 else 1
        n_t_inner = n_t // n_chunks

        wfull3 = lambda b, c, t: (0, 0)
        ssum_p, ssq_p = pl.pallas_call(
            functools.partial(_stats_kernel, hw=hw, t_hw=t_hw,
                              n_t_inner=n_t_inner, padded=padded),
            grid=(B, n_chunks, n_t_inner),
            in_specs=[
                pl.BlockSpec((1, cin, t_hw),
                             lambda b, c, t: (b, 0, c * n_t_inner + t)),
                pl.BlockSpec((c1, cin), wfull3),
                pl.BlockSpec((c1, 1), wfull3),
                pl.BlockSpec((c2, c1), wfull3),
                pl.BlockSpec((c2, 1), wfull3),
            ],
            out_specs=[
                pl.BlockSpec((1, 1, c2, 1), lambda b, c, t: (b, c, 0, 0)),
                pl.BlockSpec((1, 1, c2, 1), lambda b, c, t: (b, c, 0, 0)),
            ],
            out_shape=(
                jax.ShapeDtypeStruct((B, n_chunks, c2, 1), jnp.float32),
                jax.ShapeDtypeStruct((B, n_chunks, c2, 1), jnp.float32),
            ),
            compiler_params=pltpu.CompilerParams(
                dimension_semantics=("parallel", "parallel", "arbitrary"),
                vmem_limit_bytes=vmem_limit),
        )(x_flat, w1, b1, w2, b2)

        # Tiny XLA epilogue: combine the per-chunk partial statistics.
        ssum = jnp.sum(ssum_p, axis=1)   # (B, C2, 1)
        ssq = jnp.sum(ssq_p, axis=1)

        wfull2 = lambda b, t: (0, 0)
        out = pl.pallas_call(
            functools.partial(_head_kernel, inv_hw=inv_hw),
            grid=(B, n_t),
            in_specs=[
                pl.BlockSpec((1, cin, t_hw), lambda b, t: (b, 0, t)),
                pl.BlockSpec((c1, cin), wfull2),
                pl.BlockSpec((c1, 1), wfull2),
                pl.BlockSpec((c2, c1), wfull2),
                pl.BlockSpec((c2, 1), wfull2),
                pl.BlockSpec((1, c2, 1), lambda b, t: (b, 0, 0)),
                pl.BlockSpec((1, c2, 1), lambda b, t: (b, 0, 0)),
                pl.BlockSpec((1, c2), wfull2),
                pl.BlockSpec((1, 1), wfull2),
            ],
            out_specs=pl.BlockSpec((1, 1, t_hw), lambda b, t: (b, 0, t)),
            out_shape=jax.ShapeDtypeStruct((B, 1, hw_p), jnp.float32),
            compiler_params=pltpu.CompilerParams(
                dimension_semantics=("parallel", "parallel"),
                vmem_limit_bytes=vmem_limit),
        )(x_flat, w1, b1, w2, b2, ssum, ssq, w3, b3)

    if padded:
        out = out[:, :, :hw]
    return out.reshape(B, 1, H, W)


# ----------------------------------------------------------------------------
# Pure-JAX f32 reference (same math, no Pallas) for a loose numerical check.
# ----------------------------------------------------------------------------
def reference_forward(x, params):
    def conv1x1(h, w, b):
        w2d = w.reshape(w.shape[0], w.shape[1])
        return jnp.einsum("oc,bchw->bohw", w2d, h) + b[None, :, None, None]

    h = conv1x1(x, params["w1"], params["b1"])
    h = jnp.where(h >= 0, h, _SLOPE * h)
    h = conv1x1(h, params["w2"], params["b2"])
    mean = h.mean(axis=(2, 3), keepdims=True)
    var = ((h - mean) ** 2).mean(axis=(2, 3), keepdims=True)   # biased, like PyTorch
    h = (h - mean) / jnp.sqrt(var + _EPS)
    h = jnp.where(h >= 0, h, _SLOPE * h)
    h = conv1x1(h, params["w3"], params["b3"])
    return jax.nn.sigmoid(h)


def init_params(key, input_c=2, output_c=2, ndf=64):
    cin = input_c + output_c
    ks = jax.random.split(key, 6)
    s = 0.05
    w = lambda k, shape: jax.random.normal(k, shape, jnp.float32) * s
    return {
        "w1": w(ks[0], (ndf, cin, 1, 1)),
        "b1": w(ks[1], (ndf,)),
        "w2": w(ks[2], (ndf * 2, ndf, 1, 1)),
        "b2": w(ks[3], (ndf * 2,)),
        "w3": w(ks[4], (1, ndf * 2, 1, 1)),
        "b3": w(ks[5], (1,)),
    }


if __name__ == "__main__":
    key = jax.random.PRNGKey(0)
    kx, kp = jax.random.split(key)
    params = init_params(kp)

    # Test 1: input = concat of input_c=2 and output_c=2 channels -> 4 ch, 16x16.
    # hw=256 fits one tile -> fully-fused single-launch path.
    x = jax.random.normal(kx, (2, 4, 16, 16), jnp.float32)
    fwd = jax.jit(pixel_discriminator)
    out = jax.block_until_ready(fwd(x, params))
    assert out.shape == (2, 1, 16, 16), out.shape
    assert bool(jnp.all(jnp.isfinite(out)))
    assert bool(jnp.all((out >= 0.0) & (out <= 1.0)))
    ref = jax.block_until_ready(jax.jit(reference_forward)(x, params))
    err = float(jnp.max(jnp.abs(out - ref)))
    assert err < 3e-2, f"fused path: max |pallas - reference| = {err}"

    # Test 2: force the two-pass (stats + recompute) path with chunked reduction.
    x2 = jax.random.normal(jax.random.PRNGKey(1), (1, 4, 32, 32), jnp.float32)
    fwd_tiled = jax.jit(functools.partial(pixel_discriminator, max_tile=256))
    out2 = jax.block_until_ready(fwd_tiled(x2, params))
    ref2 = jax.block_until_ready(jax.jit(reference_forward)(x2, params))
    err2 = float(jnp.max(jnp.abs(out2 - ref2)))
    assert out2.shape == (1, 1, 32, 32)
    assert err2 < 3e-2, f"tiled path: max |pallas - reference| = {err2}"

    # Test 3: non-128-divisible H*W exercises padding + masked statistics.
    x3 = jax.random.normal(jax.random.PRNGKey(2), (1, 4, 10, 10), jnp.float32)
    out3 = jax.block_until_ready(jax.jit(pixel_discriminator)(x3, params))
    ref3 = jax.block_until_ready(jax.jit(reference_forward)(x3, params))
    err3 = float(jnp.max(jnp.abs(out3 - ref3)))
    assert out3.shape == (1, 1, 10, 10)
    assert err3 < 3e-2, f"padded path: max |pallas - reference| = {err3}"

    print("KERNEL_OK")
</pallas_src>

<mosaic_0001>
module attributes {stable_mosaic.version = 11 : i64} {
  func.func @_fused_kernel(%arg0: i32, %arg1: memref<1x4x256xbf16, #tpu.memory_space<vmem>>, %arg2: memref<64x4xbf16, #tpu.memory_space<vmem>>, %arg3: memref<64x1xf32, #tpu.memory_space<vmem>>, %arg4: memref<128x64xbf16, #tpu.memory_space<vmem>>, %arg5: memref<128x1xf32, #tpu.memory_space<vmem>>, %arg6: memref<1x128xbf16, #tpu.memory_space<vmem>>, %arg7: memref<1x1xf32, #tpu.memory_space<vmem>>, %arg8: memref<1x1x256xf32, #tpu.memory_space<vmem>>) attributes {dimension_semantics = [#tpu.dimension_semantics<parallel>], iteration_bounds = array<i64: 2>, scalar_prefetch = 0 : i64, scratch_operands = 0 : i64, tpu.core_type = #tpu.core_type<tc>, window_params = [{transform_indices = @transform_0, window_bounds = array<i64: 1, 4, 256>}, {pipeline_mode = #tpu.pipeline_mode<synchronous>, transform_indices = @transform_1, window_bounds = array<i64: 64, 4>}, {pipeline_mode = #tpu.pipeline_mode<synchronous>, transform_indices = @transform_2, window_bounds = array<i64: 64, 1>}, {pipeline_mode = #tpu.pipeline_mode<synchronous>, transform_indices = @transform_3, window_bounds = array<i64: 128, 64>}, {pipeline_mode = #tpu.pipeline_mode<synchronous>, transform_indices = @transform_4, window_bounds = array<i64: 128, 1>}, {pipeline_mode = #tpu.pipeline_mode<synchronous>, transform_indices = @transform_5, window_bounds = array<i64: 1, 128>}, {pipeline_mode = #tpu.pipeline_mode<synchronous>, transform_indices = @transform_6, window_bounds = array<i64: 1, 1>}, {transform_indices = @transform_7, window_bounds = array<i64: 1, 1, 256>}]} {
    %c0 = arith.constant 0 : index
    %c0_0 = arith.constant 0 : index
    %c0_1 = arith.constant 0 : index
    %0 = vector.load %arg1[%c0, %c0_0, %c0_1] : memref<1x4x256xbf16, #tpu.memory_space<vmem>>, vector<1x4x256xbf16>
    %1 = vector.shape_cast %0 : vector<1x4x256xbf16> to vector<4x256xbf16>
    %c0_2 = arith.constant 0 : index
    %c0_3 = arith.constant 0 : index
    %2 = vector.load %arg2[%c0_2, %c0_3] : memref<64x4xbf16, #tpu.memory_space<vmem>>, vector<64x4xbf16>
    %cst = arith.constant dense<0.000000e+00> : vector<64x256xf32>
    %3 = tpu.matmul %2, %1, %cst {dimension_numbers = #tpu.dot_dimension_numbers<[1], [0], [0], [1], [0, 0, 1, 1], [], []>} : vector<64x4xbf16>, vector<4x256xbf16>, vector<64x256xf32> -> vector<64x256xf32>
    %c0_4 = arith.constant 0 : index
    %c0_5 = arith.constant 0 : index
    %4 = vector.load %arg3[%c0_4, %c0_5] : memref<64x1xf32, #tpu.memory_space<vmem>>, vector<64x1xf32>
    %5 = vector.broadcast %4 : vector<64x1xf32> to vector<64x256xf32>
    %6 = arith.addf %3, %5 : vector<64x256xf32>
    %cst_6 = arith.constant 0.000000e+00 : f32
    %7 = vector.broadcast %cst_6 : f32 to vector<64x256xf32>
    %8 = arith.cmpf oge, %6, %7 : vector<64x256xf32>
    %cst_7 = arith.constant 2.000000e-01 : f32
    %9 = vector.broadcast %cst_7 : f32 to vector<64x256xf32>
    %10 = arith.mulf %9, %6 : vector<64x256xf32>
    %11 = arith.select %8, %6, %10 : vector<64x256xi1>, vector<64x256xf32>
    %c0_8 = arith.constant 0 : index
    %c0_9 = arith.constant 0 : index
    %12 = vector.load %arg4[%c0_8, %c0_9] : memref<128x64xbf16, #tpu.memory_space<vmem>>, vector<128x64xbf16>
    %13 = arith.truncf %11 : vector<64x256xf32> to vector<64x256xbf16>
    %cst_10 = arith.constant dense<0.000000e+00> : vector<128x256xf32>
    %14 = tpu.matmul %12, %13, %cst_10 {dimension_numbers = #tpu.dot_dimension_numbers<[1], [0], [0], [1], [0, 0, 1, 1], [], []>} : vector<128x64xbf16>, vector<64x256xbf16>, vector<128x256xf32> -> vector<128x256xf32>
    %c0_11 = arith.constant 0 : index
    %c0_12 = arith.constant 0 : index
    %15 = vector.load %arg5[%c0_11, %c0_12] : memref<128x1xf32, #tpu.memory_space<vmem>>, vector<128x1xf32>
    %16 = vector.broadcast %15 : vector<128x1xf32> to vector<128x256xf32>
    %17 = arith.addf %14, %16 : vector<128x256xf32>
    %cst_13 = arith.constant dense<0.000000e+00> : vector<128xf32>
    %18 = vector.multi_reduction <add>, %17, %cst_13 [1] : vector<128x256xf32> to vector<128xf32>
    %19 = vector.shape_cast %18 : vector<128xf32> to vector<128x1xf32>
    %20 = arith.mulf %17, %17 : vector<128x256xf32>
    %cst_14 = arith.constant dense<0.000000e+00> : vector<128xf32>
    %21 = vector.multi_reduction <add>, %20, %cst_14 [1] : vector<128x256xf32> to vector<128xf32>
    %22 = vector.shape_cast %21 : vector<128xf32> to vector<128x1xf32>
    %cst_15 = arith.constant 3.906250e-03 : f32
    %23 = vector.broadcast %cst_15 : f32 to vector<128x1xf32>
    %24 = arith.mulf %19, %23 : vector<128x1xf32>
    %cst_16 = arith.constant 3.906250e-03 : f32
    %25 = vector.broadcast %cst_16 : f32 to vector<128x1xf32>
    %26 = arith.mulf %22, %25 : vector<128x1xf32>
    %27 = arith.mulf %24, %24 : vector<128x1xf32>
    %28 = arith.subf %26, %27 : vector<128x1xf32>
    %cst_17 = arith.constant 9.99999974E-6 : f32
    %29 = vector.broadcast %cst_17 : f32 to vector<128x1xf32>
    %30 = arith.addf %28, %29 : vector<128x1xf32>
    %31 = math.rsqrt %30 : vector<128x1xf32>
    %32 = vector.broadcast %24 : vector<128x1xf32> to vector<128x256xf32>
    %33 = arith.subf %17, %32 : vector<128x256xf32>
    %34 = vector.broadcast %31 : vector<128x1xf32> to vector<128x256xf32>
    %35 = arith.mulf %33, %34 : vector<128x256xf32>
    %cst_18 = arith.constant 0.000000e+00 : f32
    %36 = vector.broadcast %cst_18 : f32 to vector<128x256xf32>
    %37 = arith.cmpf oge, %35, %36 : vector<128x256xf32>
    %cst_19 = arith.constant 2.000000e-01 : f32
    %38 = vector.broadcast %cst_19 : f32 to vector<128x256xf32>
    %39 = arith.mulf %38, %35 : vector<128x256xf32>
    %40 = arith.select %37, %35, %39 : vector<128x256xi1>, vector<128x256xf32>
    %c0_20 = arith.constant 0 : index
    %c0_21 = arith.constant 0 : index
    %41 = vector.load %arg6[%c0_20, %c0_21] : memref<1x128xbf16, #tpu.memory_space<vmem>>, vector<1x128xbf16>
    %42 = arith.truncf %40 : vector<128x256xf32> to vector<128x256xbf16>
    %cst_22 = arith.constant dense<0.000000e+00> : vector<1x256xf32>
    %43 = tpu.matmul %41, %42, %cst_22 {dimension_numbers = #tpu.dot_dimension_numbers<[1], [0], [0], [1], [0, 0, 1, 1], [], []>} : vector<1x128xbf16>, vector<128x256xbf16>, vector<1x256xf32> -> vector<1x256xf32>
    %c0_23 = arith.constant 0 : index
    %c0_24 = arith.constant 0 : index
    %44 = vector.load %arg7[%c0_23, %c0_24] : memref<1x1xf32, #tpu.memory_space<vmem>>, vector<1x1xf32>
    %45 = vector.broadcast %44 : vector<1x1xf32> to vector<1x256xf32>
    %46 = arith.addf %43, %45 : vector<1x256xf32>
    %cst_25 = arith.constant 0.000000e+00 : f32
    %47 = vector.broadcast %cst_25 : f32 to vector<1x256xf32>
    %48 = arith.subf %47, %46 : vector<1x256xf32>
    %49 = math.exp %48 : vector<1x256xf32>
    %cst_26 = arith.constant 1.000000e+00 : f32
    %50 = vector.broadcast %cst_26 : f32 to vector<1x256xf32>
    %51 = arith.addf %50, %49 : vector<1x256xf32>
    %cst_27 = arith.constant 1.000000e+00 : f32
    %52 = vector.broadcast %cst_27 : f32 to vector<1x256xf32>
    %53 = arith.divf %52, %51 : vector<1x256xf32>
    %c0_28 = arith.constant 0 : index
    %c0_29 = arith.constant 0 : index
    %c0_30 = arith.constant 0 : index
    %54 = vector.load %arg8[%c0_28, %c0_29, %c0_30] : memref<1x1x256xf32, #tpu.memory_space<vmem>>, vector<1x1x256xf32>
    %55 = vector.shape_cast %54 : vector<1x1x256xf32> to vector<1x256xf32>
    %56 = vector.shape_cast %53 : vector<1x256xf32> to vector<1x1x256xf32>
    tpu.vector_store %arg8[%c0_28, %c0_29, %c0_30], %56 {strides = array<i32>} : memref<1x1x256xf32, #tpu.memory_space<vmem>>, vector<1x1x256xf32>,
    return
  }
  func.func @transform_0(%arg0: i32) -> (i32, i32, i32) {
    %c0_i32 = arith.constant 0 : i32
    %c0_i32_0 = arith.constant 0 : i32
    %c0_i32_1 = arith.constant 0 : i32
    return %arg0, %c0_i32, %c0_i32_0 : i32, i32, i32
  }
  func.func @transform_1(%arg0: i32) -> (i32, i32) {
    %c0_i32 = arith.constant 0 : i32
    %c0_i32_0 = arith.constant 0 : i32
    %c0_i32_1 = arith.constant 0 : i32
    return %c0_i32, %c0_i32_0 : i32, i32
  }
  func.func @transform_2(%arg0: i32) -> (i32, i32) {
    %c0_i32 = arith.constant 0 : i32
    %c0_i32_0 = arith.constant 0 : i32
    %c0_i32_1 = arith.constant 0 : i32
    return %c0_i32, %c0_i32_0 : i32, i32
  }
  func.func @transform_3(%arg0: i32) -> (i32, i32) {
    %c0_i32 = arith.constant 0 : i32
    %c0_i32_0 = arith.constant 0 : i32
    %c0_i32_1 = arith.constant 0 : i32
    return %c0_i32, %c0_i32_0 : i32, i32
  }
  func.func @transform_4(%arg0: i32) -> (i32, i32) {
    %c0_i32 = arith.constant 0 : i32
    %c0_i32_0 = arith.constant 0 : i32
    %c0_i32_1 = arith.constant 0 : i32
    return %c0_i32, %c0_i32_0 : i32, i32
  }
  func.func @transform_5(%arg0: i32) -> (i32, i32) {
    %c0_i32 = arith.constant 0 : i32
    %c0_i32_0 = arith.constant 0 : i32
    %c0_i32_1 = arith.constant 0 : i32
    return %c0_i32, %c0_i32_0 : i32, i32
  }
  func.func @transform_6(%arg0: i32) -> (i32, i32) {
    %c0_i32 = arith.constant 0 : i32
    %c0_i32_0 = arith.constant 0 : i32
    %c0_i32_1 = arith.constant 0 : i32
    return %c0_i32, %c0_i32_0 : i32, i32
  }
  func.func @transform_7(%arg0: i32) -> (i32, i32, i32) {
    %c0_i32 = arith.constant 0 : i32
    %c0_i32_0 = arith.constant 0 : i32
    %c0_i32_1 = arith.constant 0 : i32
    return %arg0, %c0_i32, %c0_i32_0 : i32, i32, i32
  }
}

</mosaic_0001>

<bundles_post_ra>
// kernel: pixel_discriminator.1
= control target key start
LH: loop header
LB: loop body
LE: loop exit
PB: predicated region body
PF: predicated region fallthrough
CT: control target
= control target key end

     0   :  { %s1647_s26 = smov 0   ;;  %s2407_s0 = inlined_call_operand.vmem [shape: bf16[2,4,256], index: 0, kind: input, shape index: {}]   ;;  %s2408_s1 = inlined_call_operand.vmem [shape: bf16[64,4], index: 1, kind: input, shape index: {}]   ;;  %s2409_s2 = inlined_call_operand.vmem [shape: f32[64,1], index: 2, kind: input, shape index: {}]   ;;  %s2410_s3 = inlined_call_operand.vmem [shape: bf16[128,64], index: 3, kind: input, shape index: {}]   ;;  %s2411_s4 = inlined_call_operand.vmem [shape: f32[128,1], index: 4, kind: input, shape index: {}]   ;;  %s2412_s5 = inlined_call_operand.vmem [shape: bf16[1,128], index: 5, kind: input, shape index: {}]   ;;  %s2413_s6 = inlined_call_operand.<no memory space> [shape: f32[1,1], index: 6, kind: input, shape index: {}]   ;;  %s2414_s7 = inlined_call_operand.vmem [shape: f32[2,1,256], index: 7, kind: output, shape index: {}]  }
   0x1   :  { %v12_v0 = vstv %s2413_s6 }
   0x2   :  { %13 = vst [vmem:[#allocation2] sm:$0x1] %v12_v0 }
   0x3 LB: > { %s1448_s27 = sadd.s32 4294967295, %s1601_s26   ;;  %p1452_p0 = scmp.ge.s32.totalorder %s1601_s26, 1  ;;  %s1601_s26 = sphi %s1647_s26, %s19_s26  }
   0x4   : > { %p239_p1 = scmp.lt.s32.totalorder %s1601_s26, 3 }
   0x6   : > { %p240_p2 = pnand %p1452_p0, %p239_p1 }
   0x7   : > { %p270_p3 = scmp.lt.s32.totalorder (!%p240_p2), %s1448_s27, 1 }
   0x8   : > { %243 = sbr.rel (%p240_p2) target bundleno = 838 (0x346), region = 48 }
   0xd   : > { %v295_v1 = vld [vmem:[%s2409_s2 + $0x30] sm:$0xff]  ;;  %v1603_v2 = vmov 0   ;;  %v293_v3 = vld [vmem:[%s2409_s2 + $0x20] sm:$0xff]  ;;  %s2424_s27 = smov (!%p270_p3, %s1448_s27), 1  ;;  %v296_v5 = vld [vmem:[%s2409_s2 + $0x38] sm:$0xff]  ;;  %vm374_vm0 = vcmask 1041408  }
   0xe   : > { %1552 = vset.pattern.permute.xlu0 %v1603_v2  ;;  %1553 = vset.pattern.permute.xlu1 %v1603_v2  ;;  %s1530_s8 = sshll.u32 %s2424_s27, 2  ;;  %v294_v6 = vld [vmem:[%s2409_s2 + $0x28] sm:$0xff]  ;;  %v1531_v11 = vld [vmem:[%s2408_s1] sm:$0xff]  ;;  %vm361_vm1 = vcmask 31744   ;;  %v291_v14 = vld [vmem:[%s2409_s2 + $0x10] sm:$0xff]  ;;  %s1455_s16 = sshll.u32 %s2424_s27, 1 }
   0xf   : > { %329 = vperm.xlu0 %1552, %v295_v1   ;;  %319 = vperm.xlu1 %1553, %v293_v3   ;;  %s274_s11 = scalar_lea.vmem %s2407_s0, %s1530_s8  ;;  %v289_v12 = vld [vmem:[%s2409_s2] sm:$0xff]  ;;  %v290_v13 = vld [vmem:[%s2409_s2 + $0x8] sm:$0xff]  ;;  %v524_v15 = vld [vmem:[%s2411_s4 + $0x78] sm:$0xff]  ;;  %s278_s19 = scalar_lea.vmem %s2414_s7, %s1455_s16 }
  0x10   : > { %1554 = vset.pattern.permute.xlu2 %v1603_v2  ;;  %v280_v4 = vld [vmem:[%s274_s11] sm:$0xf]  ;;  %v292_v17 = vld [vmem:[%s2409_s2 + $0x18] sm:$0xff]  ;;  %v1532_v18 = vld [vmem:[%s2408_s1 + $0x8] sm:$0xff] }
  0x11   : > { %358 = vst [vmem:[#allocation1] ss:$4 sm:$0xff] %v280_v4  ;;  %309 = vperm.xlu2 %1554, %v291_v14   ;;  %v521_v16 = vld [vmem:[%s2411_s4 + $0x60] sm:$0xff]  ;;  %v519_v19 = vld [vmem:[%s2411_s4 + $0x50] sm:$0xff]  ;;  %v520_v20 = vld [vmem:[%s2411_s4 + $0x58] sm:$0xff] }
  0x12   : > { %v523_v21 = vld [vmem:[%s2411_s4 + $0x70] sm:$0xff]  ;;  %v518_v22 = vld [vmem:[%s2411_s4 + $0x48] sm:$0xff]  ;;  %v513_v26 = vld [vmem:[%s2411_s4 + $0x20] sm:$0xff] }
  0x13   : > { %v515_v23 = vld [vmem:[%s2411_s4 + $0x30] sm:$0xff]  ;;  %v522_v24 = vld [vmem:[%s2411_s4 + $0x68] sm:$0xff]  ;;  %v517_v28 = vld [vmem:[%s2411_s4 + $0x40] sm:$0xff] }
  0x14   : > { %v1533_v25 = vld [vmem:[%s2408_s1 + $0x10] sm:$0xff]  ;;  %v514_v27 = vld [vmem:[%s2411_s4 + $0x28] sm:$0xff]  ;;  %v512_v29 = vld [vmem:[%s2411_s4 + $0x18] sm:$0xff] }
  0x15   : > { %v509_v30 = vld [vmem:[%s2411_s4] sm:$0xff]  ;;  %v516_v31 = vld [vmem:[%s2411_s4 + $0x38] sm:$0xff]  ;;  %v511_v33 = vld [vmem:[%s2411_s4 + $0x10] sm:$0xff] }
  0x16   : > { %v1534_v32 = vld [vmem:[%s2408_s1 + $0x18] sm:$0xff]  ;;  %v510_v34 = vld [vmem:[%s2411_s4 + $0x8] sm:$0xff] }
  0x17   : > { %334 = vperm.xlu0 %1552, %v296_v5   ;;  %324 = vperm.xlu1 %1553, %v294_v6  }
  0x18   : > { %v359_v7 = vld.sshfl [vmem:[#allocation1] sm:$0xff pattern:$0x73625140]  ;;  %v360_v8 = vld.sshfl [vmem:[#allocation1 + $0x8] sm:$0xff pattern:$0x73625140] }
  0x19   : > { %v375_v9 = vsel %vm374_vm0, %v359_v7, 0  ;;  %v377_v10 = vsel %vm374_vm0, %v360_v8, 0  ;;  %314 = vperm.xlu2 %1554, %v292_v17  }
  0x1a   : > { %386 = vmatpush.bf16.msra.mxu0 %v375_v9  ;;  %415 = vmatpush.bf16.msra.mxu1 %v377_v10 }
  0x1d   : > { %1472 = vmatmul.msk.bf16.vlgmr.msra.gmra.mxu0 %vm361_vm1, %v1531_v11  ;;  %1476 = vmatmul.msk.bf16.vlgmr.msra.gmra.mxu1 %vm361_vm1, %v1531_v11 }
  0x1f   : > { %299 = vperm.xlu0 %1552, %v289_v12   ;;  %304 = vperm.xlu1 %1553, %v290_v13  }
  0x21   : > { %597 = vperm.xlu2 %1554, %v523_v21  }
  0x27   : > { %602 = vperm.xlu0 %1552, %v524_v15   ;;  %587 = vperm.xlu1 %1553, %v521_v16  }
  0x29   : > { %592 = vperm.xlu2 %1554, %v522_v24  }
  0x2d   : > { %1473 = vmatmul.msk.bf16.gmra.mxu0 %vm361_vm1, %v1532_v18  ;;  %1477 = vmatmul.msk.bf16.gmra.mxu1 %vm361_vm1, %v1532_v18 }
  0x2f   : > { %577 = vperm.xlu0 %1552, %v519_v19   ;;  %582 = vperm.xlu1 %1553, %v520_v20  }
  0x31   : > { %567 = vperm.xlu2 %1554, %v517_v28  }
  0x37   : > { %572 = vperm.xlu0 %1552, %v518_v22   ;;  %557 = vperm.xlu1 %1553, %v515_v23  }
  0x39   : > { %562 = vperm.xlu2 %1554, %v516_v31  }
  0x3d   : > { %1474 = vmatmul.msk.bf16.gmra.mxu0 %vm361_vm1, %v1533_v25  ;;  %1478 = vmatmul.msk.bf16.gmra.mxu1 %vm361_vm1, %v1533_v25 }
  0x3f   : > { %547 = vperm.xlu0 %1552, %v513_v26   ;;  %552 = vperm.xlu1 %1553, %v514_v27  }
  0x41   : > { %537 = vperm.xlu2 %1554, %v511_v33  }
  0x47   : > { %542 = vperm.xlu0 %1552, %v512_v29   ;;  %527 = vperm.xlu1 %1553, %v509_v30  }
  0x49   : > { %532 = vperm.xlu2 %1554, %v510_v34  }
  0x4d   : > { %1475 = vmatmul.msk.bf16.gmra.mxu0 %vm361_vm1, %v1534_v32  ;;  %1479 = vmatmul.msk.bf16.gmra.mxu1 %vm361_vm1, %v1534_v32 }
  0x6b   : > { %v310_v50 = vpop.permute.xlu2 %309 }
  0x73   : > { %v315_v59 = vpop.permute.xlu2 %314 }
  0x81   : > { %v320_v43 = vpop.permute.xlu1 %319  ;;  %v330_v48 = vpop.permute.xlu0 %329 }
  0x89   : > { %v325_v49 = vpop.permute.xlu1 %324  ;;  %v335_v53 = vpop.permute.xlu0 %334 }
  0x91   : > { %v305_v54 = vpop.permute.xlu1 %304  ;;  %v300_v16 = vpop.permute.xlu0 %299 }
  0x9a   : > { %v1753_v35 = vpop.f32.mrf.mxu0  ;;  %v1755_v36 = vpop.f32.mrf.mxu1 }
  0x9b   : > { %v389_v27 = vadd.f32 %v1753_v35, %v300_v16  ;;  %v418_v28 = vadd.f32 %v1755_v36, %v300_v16 }
  0x9d   : > { %v453_v36 = vmul.f32 0.2, %v389_v27  ;;  %vm437_vm0 = vcmp.ge.f32.partialorder %v389_v27, 0.0  ;;  %vm438_vm1 = vcmp.ge.f32.partialorder %v418_v28, 0.0 }
  0xa2   : > { %v390_v37 = vpop.f32.mrf.mxu0  ;;  %v419_v38 = vpop.f32.mrf.mxu1 }
  0xa3   : > { %v1757_v60 = vadd.f32 %v390_v37, %v305_v54  ;;  %v1759_v61 = vadd.f32 %v419_v38, %v305_v54  ;;  %v1538_v54 = vld [vmem:[%s2410_s3 + $0x18] sm:$0xff] }
  0xa5   : > { %v455_v37 = vmul.f32 0.2, %v1757_v60  ;;  %v456_v38 = vmul.f32 0.2, %v1759_v61  ;;  %vm439_vm14 = vcmp.ge.f32.partialorder %v1757_v60, 0.0  ;;  %vm440_vm15 = vcmp.ge.f32.partialorder %v1759_v61, 0.0 }
  0xaa   : > { %v393_v39 = vpop.f32.mrf.mxu0  ;;  %v422_v40 = vpop.f32.mrf.mxu1 }
  0xab   : > { %v394_v62 = vadd.f32 %v393_v39, %v310_v50  ;;  %v423_v63 = vadd.f32 %v422_v40, %v310_v50  ;;  %v454_v40 = vmul.f32 0.2, %v418_v28 }
  0xad   : > { %v457_v29 = vmul.f32 0.2, %v394_v62  ;;  %v458_v30 = vmul.f32 0.2, %v423_v63  ;;  %vm441_vm12 = vcmp.ge.f32.partialorder %v394_v62, 0.0  ;;  %vm442_vm13 = vcmp.ge.f32.partialorder %v423_v63, 0.0 }
  0xb2   : > { %v395_v41 = vpop.f32.mrf.mxu0  ;;  %v424_v42 = vpop.f32.mrf.mxu1 }
  0xb3   : > { %v396_v0 = vadd.f32 %v395_v41, %v315_v59  ;;  %v425_v1 = vadd.f32 %v424_v42, %v315_v59  ;;  %v473_v41 = vsel %vm441_vm12, %v394_v62, %v457_v29  ;;  %v474_v42 = vsel %vm442_vm13, %v423_v63, %v458_v30 }
  0xb5   : > { %v459_v23 = vmul.f32 0.2, %v396_v0  ;;  %v460_v24 = vmul.f32 0.2, %v425_v1  ;;  %vm443_vm10 = vcmp.ge.f32.partialorder %v396_v0, 0.0  ;;  %vm444_vm11 = vcmp.ge.f32.partialorder %v425_v1, 0.0 }
  0xb7   : > { %v475_v39 = vsel %vm443_vm10, %v396_v0, %v459_v23  ;;  %v476_v35 = vsel %vm444_vm11, %v425_v1, %v460_v24 }
  0xba   : > { %v398_v44 = vpop.f32.mrf.mxu0  ;;  %v427_v45 = vpop.f32.mrf.mxu1 }
  0xbb   : > { %v399_v2 = vadd.f32 %v398_v44, %v320_v43  ;;  %v428_v3 = vadd.f32 %v427_v45, %v320_v43  ;;  %v503_v43 = vpack.c.bf16 %v475_v39, %v473_v41  ;;  %v504_v44 = vpack.c.bf16 %v476_v35, %v474_v42 }
  0xbc   : > { %v471_v45 = vsel %vm439_vm14, %v1757_v60, %v455_v37 }
  0xbd   : > { %v461_v14 = vmul.f32 0.2, %v399_v2  ;;  %v462_v15 = vmul.f32 0.2, %v428_v3  ;;  %vm445_vm8 = vcmp.ge.f32.partialorder %v399_v2, 0.0  ;;  %vm446_vm9 = vcmp.ge.f32.partialorder %v428_v3, 0.0 }
  0xbf   : > { %v477_v31 = vsel %vm445_vm8, %v399_v2, %v461_v14  ;;  %v478_v32 = vsel %vm446_vm9, %v428_v3, %v462_v15  ;;  %v1825_v3 = vpop.permute.xlu2 %597 }
  0xc2   : > { %v400_v46 = vpop.f32.mrf.mxu0  ;;  %v429_v47 = vpop.f32.mrf.mxu1 }
  0xc3   : > { %v401_v57 = vadd.f32 %v400_v46, %v325_v49  ;;  %v430_v58 = vadd.f32 %v429_v47, %v325_v49  ;;  %v472_v46 = vsel %vm440_vm15, %v1759_v61, %v456_v38  ;;  %v469_v47 = vsel %vm437_vm0, %v389_v27, %v453_v36 }
  0xc4   : > { %v501_v49 = vpack.c.bf16 %v471_v45, %v469_v47 }
  0xc5   : > { %v463_v10 = vmul.f32 0.2, %v401_v57  ;;  %v464_v11 = vmul.f32 0.2, %v430_v58  ;;  %vm447_vm6 = vcmp.ge.f32.partialorder %v401_v57, 0.0  ;;  %vm448_vm7 = vcmp.ge.f32.partialorder %v430_v58, 0.0 }
  0xc7   : > { %v479_v25 = vsel %vm447_vm6, %v401_v57, %v463_v10  ;;  %v480_v26 = vsel %vm448_vm7, %v430_v58, %v464_v11  ;;  %v1541_v57 = vld [vmem:[%s2410_s3 + $0x30] sm:$0xff]  ;;  %v1542_v58 = vld [vmem:[%s2410_s3 + $0x38] sm:$0xff] }
  0xc8   : > { %v505_v33 = vpack.c.bf16 %v479_v25, %v477_v31  ;;  %v506_v34 = vpack.c.bf16 %v480_v26, %v478_v32 }
  0xca   : > { %v403_v51 = vpop.f32.mrf.mxu0  ;;  %v432_v52 = vpop.f32.mrf.mxu1 }
  0xcb   : > { %v404_v55 = vadd.f32 %v403_v51, %v330_v48  ;;  %v433_v56 = vadd.f32 %v432_v52, %v330_v48  ;;  %v470_v48 = vsel %vm438_vm1, %v418_v28, %v454_v40  ;;  %v1535_v51 = vld [vmem:[%s2410_s3] sm:$0xff]  ;;  %v1536_v52 = vld [vmem:[%s2410_s3 + $0x8] sm:$0xff] }
  0xcc   : > { %v502_v50 = vpack.c.bf16 %v472_v46, %v470_v48 }
  0xcd   : > { %v465_v6 = vmul.f32 0.2, %v404_v55  ;;  %v466_v7 = vmul.f32 0.2, %v433_v56  ;;  %vm449_vm2 = vcmp.ge.f32.partialorder %v404_v55, 0.0  ;;  %vm450_vm3 = vcmp.ge.f32.partialorder %v433_v56, 0.0 }
  0xcf   : > { %v481_v17 = vsel %vm449_vm2, %v404_v55, %v465_v6  ;;  %v482_v19 = vsel %vm450_vm3, %v433_v56, %v466_v7  ;;  %vm645_vm2 = vcmask 523264   ;;  %v1539_v55 = vld [vmem:[%s2410_s3 + $0x20] sm:$0xff]  ;;  %v1540_v56 = vld [vmem:[%s2410_s3 + $0x28] sm:$0xff]  ;;  %v1833_v7 = vpop.permute.xlu2 %592 }
  0xd2   : > { %v405_v4 = vpop.f32.mrf.mxu0  ;;  %v434_v5 = vpop.f32.mrf.mxu1 }
  0xd3   : > { %v406_v8 = vadd.f32 %v405_v4, %v335_v53  ;;  %v435_v9 = vadd.f32 %v434_v5, %v335_v53  ;;  %v1537_v53 = vld [vmem:[%s2410_s3 + $0x10] sm:$0xff]  ;;  %v1827_v4 = vpop.permute.xlu1 %587 }
  0xd5   : > { %v467_v12 = vmul.f32 0.2, %v406_v8  ;;  %v468_v13 = vmul.f32 0.2, %v435_v9  ;;  %vm451_vm4 = vcmp.ge.f32.partialorder %v406_v8, 0.0  ;;  %vm452_vm5 = vcmp.ge.f32.partialorder %v435_v9, 0.0 }
  0xd7   : > { %v483_v18 = vsel %vm451_vm4, %v406_v8, %v467_v12  ;;  %v484_v20 = vsel %vm452_vm5, %v435_v9, %v468_v13  ;;  %v568_v11 = vpop.permute.xlu2 %567 }
  0xd8   : > { %v507_v21 = vpack.c.bf16 %v483_v18, %v481_v17  ;;  %v508_v22 = vpack.c.bf16 %v484_v20, %v482_v19  ;;  %v1843_v17 = vpop.permute.xlu0 %602 }
  0xda   : > { %674 = vmatpush.bf16.msra.mxu2 %v507_v21  ;;  %723 = vmatpush.bf16.msra.mxu3 %v508_v22 }
  0xdb   : > { %v583_v8 = vpop.permute.xlu1 %582 }
  0xde   : > { %675 = vmatpush.bf16.msra.mxu2 %v505_v33  ;;  %724 = vmatpush.bf16.msra.mxu3 %v506_v34 }
  0xdf   : > { %v563_v22 = vpop.permute.xlu2 %562 }
  0xe0   : > { %v578_v30 = vpop.permute.xlu0 %577 }
  0xe2   : > { %676 = vmatpush.bf16.msra.mxu2 %v503_v43  ;;  %725 = vmatpush.bf16.msra.mxu3 %v504_v44 }
  0xe3   : > { %v558_v12 = vpop.permute.xlu1 %557 }
  0xe6   : > { %677 = vmatpush.bf16.msra.mxu2 %v501_v49  ;;  %726 = vmatpush.bf16.msra.mxu3 %v502_v50 }
  0xe8   : > { %v573_v40 = vpop.permute.xlu0 %572 }
  0xe9   : > { %1512 = vmatmul.msk.bf16.vlgmr.msra.gmra.mxu2 %vm645_vm2, %v1535_v51  ;;  %1520 = vmatmul.msk.bf16.vlgmr.msra.gmra.mxu3 %vm645_vm2, %v1535_v51 }
  0xf9   : > { %1513 = vmatmul.msk.bf16.gmra.mxu2 %vm645_vm2, %v1536_v52  ;;  %1521 = vmatmul.msk.bf16.gmra.mxu3 %vm645_vm2, %v1536_v52 }
 0x109   : > { %1514 = vmatmul.msk.bf16.gmra.mxu2 %vm645_vm2, %v1537_v53  ;;  %1522 = vmatmul.msk.bf16.gmra.mxu3 %vm645_vm2, %v1537_v53 }
 0x119   : > { %1515 = vmatmul.msk.bf16.gmra.mxu2 %vm645_vm2, %v1538_v54  ;;  %1523 = vmatmul.msk.bf16.gmra.mxu3 %vm645_vm2, %v1538_v54 }
 0x129   : > { %1516 = vmatmul.msk.bf16.gmra.mxu2 %vm645_vm2, %v1539_v55  ;;  %1524 = vmatmul.msk.bf16.gmra.mxu3 %vm645_vm2, %v1539_v55 }
 0x139   : > { %1517 = vmatmul.msk.bf16.gmra.mxu2 %vm645_vm2, %v1540_v56  ;;  %1525 = vmatmul.msk.bf16.gmra.mxu3 %vm645_vm2, %v1540_v56 }
 0x149   : > { %1518 = vmatmul.msk.bf16.gmra.mxu2 %vm645_vm2, %v1541_v57  ;;  %1526 = vmatmul.msk.bf16.gmra.mxu3 %vm645_vm2, %v1541_v57 }
 0x159   : > { %1519 = vmatmul.msk.bf16.gmra.mxu2 %vm645_vm2, %v1542_v58  ;;  %1527 = vmatmul.msk.bf16.gmra.mxu3 %vm645_vm2, %v1542_v58 }
 0x16c   : > { %v1809_v59 = vpop.f32.mrf.mxu2  ;;  %v1811_v60 = vpop.f32.mrf.mxu3 }
 0x174   : > { %v1813_v61 = vpop.f32.mrf.mxu2  ;;  %v1815_v62 = vpop.f32.mrf.mxu3 }
 0x17c   : > { %v1817_v63 = vpop.f32.mrf.mxu2  ;;  %v1819_v0 = vpop.f32.mrf.mxu3 }
 0x184   : > { %v1821_v1 = vpop.f32.mrf.mxu2  ;;  %v1823_v2 = vpop.f32.mrf.mxu3 }
 0x18c   : > { %v1829_v5 = vpop.f32.mrf.mxu2  ;;  %v1831_v6 = vpop.f32.mrf.mxu3 }
 0x194   : > { %v1835_v9 = vpop.f32.mrf.mxu2  ;;  %v1837_v10 = vpop.f32.mrf.mxu3 }
 0x19c   : > { %v694_v13 = vpop.f32.mrf.mxu2  ;;  %v743_v14 = vpop.f32.mrf.mxu3 }
 0x19d   : > { %v1839_v15 = vadd.f32 %v694_v13, %v558_v12  ;;  %v1841_v16 = vadd.f32 %v743_v14, %v558_v12 }
 0x19f   : > { %v786_v18 = vadd.f32 %v1841_v16, %v1839_v15  ;;  %v828_v19 = vmul.f32 %v1839_v15, %v1839_v15  ;;  %v829_v20 = vmul.f32 %v1841_v16, %v1841_v16 }
 0x1a1   : > { %787 = vadd.xlane.f32.xlu0 %v786_v18  ;;  %v866_v21 = vadd.f32 %v829_v20, %v828_v19 }
 0x1a3   : > { %867 = vadd.xlane.f32.xlu2 %v866_v21 }
 0x1a4   : > { %v696_v23 = vpop.f32.mrf.mxu2  ;;  %v745_v24 = vpop.f32.mrf.mxu3 }
 0x1a5   : > { %v1851_v25 = vadd.f32 %v696_v23, %v563_v22  ;;  %v1853_v26 = vadd.f32 %v745_v24, %v563_v22 }
 0x1a7   : > { %v789_v27 = vadd.f32 %v1853_v26, %v1851_v25  ;;  %v830_v28 = vmul.f32 %v1851_v25, %v1851_v25  ;;  %v831_v29 = vmul.f32 %v1853_v26, %v1853_v26 }
 0x1a9   : > { %790 = vadd.xlane.f32.xlu1 %v789_v27  ;;  %v869_v31 = vadd.f32 %v831_v29, %v830_v28 }
 0x1ab   : > { %870 = vadd.xlane.f32.xlu0 %v869_v31 }
 0x1ac   : > { %v699_v32 = vpop.f32.mrf.mxu2  ;;  %v748_v33 = vpop.f32.mrf.mxu3 }
 0x1ad   : > { %v1861_v34 = vadd.f32 %v699_v32, %v568_v11  ;;  %v1863_v37 = vadd.f32 %v748_v33, %v568_v11 }
 0x1af   : > { %v792_v38 = vadd.f32 %v1863_v37, %v1861_v34  ;;  %v832_v39 = vmul.f32 %v1861_v34, %v1861_v34  ;;  %v833_v35 = vmul.f32 %v1863_v37, %v1863_v37 }
 0x1b1   : > { %793 = vadd.xlane.f32.xlu2 %v792_v38  ;;  %v872_v36 = vadd.f32 %v833_v35, %v832_v39 }
 0x1b3   : > { %873 = vadd.xlane.f32.xlu1 %v872_v36 }
 0x1b4   : > { %v701_v41 = vpop.f32.mrf.mxu2  ;;  %v750_v42 = vpop.f32.mrf.mxu3 }
 0x1b5   : > { %v1871_v43 = vadd.f32 %v701_v41, %v573_v40  ;;  %v1873_v44 = vadd.f32 %v750_v42, %v573_v40 }
 0x1b7   : > { %v795_v45 = vadd.f32 %v1873_v44, %v1871_v43  ;;  %v834_v46 = vmul.f32 %v1871_v43, %v1871_v43  ;;  %v835_v47 = vmul.f32 %v1873_v44, %v1873_v44 }
 0x1b9   : > { %796 = vadd.xlane.f32.xlu0 %v795_v45  ;;  %v875_v48 = vadd.f32 %v835_v47, %v834_v46  ;;  %v548_v45 = vpop.permute.xlu0 %547 }
 0x1ba   : > { %v1936_v46 = vadd.f32 %v1829_v5, %v548_v45  ;;  %v1939_v47 = vadd.f32 %v1831_v6, %v548_v45 }
 0x1bb   : > { %876 = vadd.xlane.f32.xlu2 %v875_v48 }
 0x1bc   : > { %v704_v49 = vpop.f32.mrf.mxu2  ;;  %v753_v50 = vpop.f32.mrf.mxu3  ;;  %v824_v5 = vmul.f32 %v1936_v46, %v1936_v46  ;;  %v825_v6 = vmul.f32 %v1939_v47, %v1939_v47 }
 0x1bd   : > { %v1881_v51 = vadd.f32 %v704_v49, %v578_v30  ;;  %v1883_v52 = vadd.f32 %v753_v50, %v578_v30 }
 0x1bf   : > { %v798_v53 = vadd.f32 %v1883_v52, %v1881_v51  ;;  %v836_v54 = vmul.f32 %v1881_v51, %v1881_v51  ;;  %v837_v55 = vmul.f32 %v1883_v52, %v1883_v52 }
 0x1c1   : > { %799 = vadd.xlane.f32.xlu1 %v798_v53  ;;  %v878_v56 = vadd.f32 %v837_v55, %v836_v54 }
 0x1c3   : > { %879 = vadd.xlane.f32.xlu0 %v878_v56 }
 0x1c4   : > { %v706_v57 = vpop.f32.mrf.mxu2  ;;  %v755_v58 = vpop.f32.mrf.mxu3 }
 0x1c5   : > { %v1891_v11 = vadd.f32 %v706_v57, %v583_v8  ;;  %v1893_v12 = vadd.f32 %v755_v58, %v583_v8 }
 0x1c7   : > { %v801_v13 = vadd.f32 %v1893_v12, %v1891_v11  ;;  %v838_v14 = vmul.f32 %v1891_v11, %v1891_v11  ;;  %v839_v18 = vmul.f32 %v1893_v12, %v1893_v12 }
 0x1c9   : > { %802 = vadd.xlane.f32.xlu2 %v801_v13  ;;  %v881_v19 = vadd.f32 %v839_v18, %v838_v14  ;;  %v860_v13 = vadd.f32 %v825_v6, %v824_v5  ;;  %v543_v14 = vpop.permute.xlu0 %542 }
 0x1ca   : > { %v1960_v18 = vadd.f32 %v1821_v1, %v543_v14 }
 0x1cb   : > { %882 = vadd.xlane.f32.xlu1 %v881_v19  ;;  %v1963_v19 = vadd.f32 %v1823_v2, %v543_v14 }
 0x1cc   : > { %v709_v20 = vpop.f32.mrf.mxu2  ;;  %v758_v21 = vpop.f32.mrf.mxu3 }
 0x1cd   : > { %v1902_v22 = vadd.f32 %v709_v20, %v1827_v4  ;;  %v1905_v8 = vadd.f32 %v758_v21, %v1827_v4  ;;  %v777_v1 = vadd.f32 %v1963_v19, %v1960_v18 }
 0x1cf   : > { %v804_v23 = vadd.f32 %v1905_v8, %v1902_v22  ;;  %v840_v24 = vmul.f32 %v1902_v22, %v1902_v22  ;;  %v841_v27 = vmul.f32 %v1905_v8, %v1905_v8 }
 0x1d1   : > { %805 = vadd.xlane.f32.xlu0 %v804_v23  ;;  %v884_v28 = vadd.f32 %v841_v27, %v840_v24  ;;  %v538_v23 = vpop.permute.xlu2 %537  ;;  %v780_v24 = vadd.f32 %v1939_v47, %v1936_v46 }
 0x1d3   : > { %885 = vadd.xlane.f32.xlu2 %v884_v28 }
 0x1d4   : > { %v711_v29 = vpop.f32.mrf.mxu2  ;;  %v760_v30 = vpop.f32.mrf.mxu3 }
 0x1d5   : > { %v1914_v31 = vadd.f32 %v711_v29, %v1833_v7  ;;  %v1917_v4 = vadd.f32 %v760_v30, %v1833_v7  ;;  %v1988_v30 = vadd.f32 %v1817_v63, %v538_v23 }
 0x1d7   : > { %v807_v32 = vadd.f32 %v1917_v4, %v1914_v31  ;;  %v842_v33 = vmul.f32 %v1914_v31, %v1914_v31  ;;  %v843_v38 = vmul.f32 %v1917_v4, %v1917_v4  ;;  %v820_v63 = vmul.f32 %v1988_v30, %v1988_v30 }
 0x1d9   : > { %808 = vadd.xlane.f32.xlu1 %v807_v32  ;;  %v887_v39 = vadd.f32 %v843_v38, %v842_v33  ;;  %v1991_v32 = vadd.f32 %v1819_v0, %v538_v23  ;;  %v533_v38 = vpop.permute.xlu2 %532 }
 0x1db   : > { %888 = vadd.xlane.f32.xlu0 %v887_v39  ;;  %v1994_v39 = vadd.f32 %v1813_v61, %v533_v38  ;;  %v821_v0 = vmul.f32 %v1991_v32, %v1991_v32  ;;  %v822_v61 = vmul.f32 %v1960_v18, %v1960_v18 }
 0x1dc   : > { %v714_v35 = vpop.f32.mrf.mxu2  ;;  %v763_v36 = vpop.f32.mrf.mxu3 }
 0x1dd   : > { %v1926_v40 = vadd.f32 %v714_v35, %v1825_v3  ;;  %v1929_v7 = vadd.f32 %v763_v36, %v1825_v3  ;;  %v1997_v35 = vadd.f32 %v1815_v62, %v533_v38  ;;  %v823_v62 = vmul.f32 %v1963_v19, %v1963_v19 }
 0x1de   : > { %v818_v36 = vmul.f32 %v1994_v39, %v1994_v39 }
 0x1df   : > { %v844_v41 = vmul.f32 %v1926_v40, %v1926_v40  ;;  %v845_v42 = vmul.f32 %v1929_v7, %v1929_v7  ;;  %v810_v49 = vadd.f32 %v1929_v7, %v1926_v40  ;;  %v857_v45 = vadd.f32 %v823_v62, %v822_v61 }
 0x1e1   : > { %v890_v48 = vadd.f32 %v845_v42, %v844_v41  ;;  %v819_v41 = vmul.f32 %v1997_v35, %v1997_v35  ;;  %v854_v42 = vadd.f32 %v821_v0, %v820_v63 }
 0x1e3   : > { %891 = vadd.xlane.f32.xlu2 %v890_v48  ;;  %811 = vadd.xlane.f32.xlu0 %v810_v49  ;;  %v851_v48 = vadd.f32 %v819_v41, %v818_v36 }
 0x1e4   : > { %v716_v3 = vpop.f32.mrf.mxu2  ;;  %v765_v50 = vpop.f32.mrf.mxu3 }
 0x1e5   : > { %v1944_v53 = vadd.f32 %v716_v3, %v1843_v17  ;;  %v1947_v54 = vadd.f32 %v765_v50, %v1843_v17  ;;  %v553_v17 = vpop.permute.xlu1 %552  ;;  %v771_v50 = vadd.f32 %v1997_v35, %v1994_v39 }
 0x1e6   : > { %v1966_v20 = vadd.f32 %v1835_v9, %v553_v17  ;;  %v1969_v21 = vadd.f32 %v1837_v10, %v553_v17 }
 0x1e7   : > { %v813_v55 = vadd.f32 %v1947_v54, %v1944_v53  ;;  %v846_v56 = vmul.f32 %v1944_v53, %v1944_v53  ;;  %v847_v57 = vmul.f32 %v1947_v54, %v1947_v54 }
 0x1e8   : > { %v783_v27 = vadd.f32 %v1969_v21, %v1966_v20  ;;  %v826_v2 = vmul.f32 %v1966_v20, %v1966_v20  ;;  %v827_v9 = vmul.f32 %v1969_v21, %v1969_v21 }
 0x1e9   : > { %814 = vadd.xlane.f32.xlu1 %v813_v55  ;;  %v893_v58 = vadd.f32 %v847_v57, %v846_v56 }
 0x1ea   : > { %v863_v33 = vadd.f32 %v827_v9, %v826_v2  ;;  %v1313_v2 = vld [vmem:[#allocation2] sm:$0x1] }
 0x1eb   : > { %894 = vadd.xlane.f32.xlu2 %v893_v58  ;;  %861 = vadd.xlane.f32.xlu0 %v860_v13 }
 0x1ed   : > { %v528_v10 = vpop.permute.xlu1 %527 }
 0x1ee   : > { %v1982_v28 = vadd.f32 %v1809_v59, %v528_v10  ;;  %v1985_v29 = vadd.f32 %v1811_v60, %v528_v10  ;;  %v774_v59 = vadd.f32 %v1991_v32, %v1988_v30 }
 0x1f0   : > { %v768_v60 = vadd.f32 %v1985_v29, %v1982_v28  ;;  %v816_v49 = vmul.f32 %v1982_v28, %v1982_v28  ;;  %v817_v3 = vmul.f32 %v1985_v29, %v1985_v29 }
 0x1f1   : > { %781 = vadd.xlane.f32.xlu1 %v780_v24 }
 0x1f2   : > { %v848_v5 = vadd.f32 %v817_v3, %v816_v49 }
 0x1f3   : > { %784 = vadd.xlane.f32.xlu2 %v783_v27  ;;  %778 = vadd.xlane.f32.xlu0 %v777_v1 }
 0x1f9   : > { %864 = vadd.xlane.f32.xlu1 %v863_v33 }
 0x1fb   : > { %775 = vadd.xlane.f32.xlu2 %v774_v59  ;;  %769 = vadd.xlane.f32.xlu0 %v768_v60 }
 0x201   : > { %855 = vadd.xlane.f32.xlu1 %v854_v42 }
 0x203   : > { %858 = vadd.xlane.f32.xlu2 %v857_v45  ;;  %852 = vadd.xlane.f32.xlu0 %v851_v48 }
 0x209   : > { %772 = vadd.xlane.f32.xlu1 %v771_v50 }
 0x20b   : > { %849 = vadd.xlane.f32.xlu2 %v848_v5 }
 0x214   : > { %v788_v6 = vpop.xlane.xlu0 %787 }
 0x215   : > { %v902_v55 = vmul.f32 0.00390625, %v788_v6 }
 0x216   : > { %v868_v56 = vpop.xlane.xlu2 %867 }
 0x217   : > { %v918_v57 = vmul.f32 0.00390625, %v868_v56  ;;  %v934_v58 = vmul.f32 %v902_v55, %v902_v55  ;;  %v1148_v3 = vsub.f32 %v1839_v15, %v902_v55  ;;  %v1149_v50 = vsub.f32 %v1841_v16, %v902_v55 }
 0x219   : > { %v950_v13 = vsub.f32 %v918_v57, %v934_v58 }
 0x21b   : > { %v966_v17 = vadd.f32 1e-05, %v950_v13 }
 0x21c   : > { %v791_v14 = vpop.xlane.xlu1 %790 }
 0x21d   : > { %1555 = vrsqrt.f32 %v966_v17  ;;  %v2021_v23 = vmul.f32 0.00390625, %v791_v14  ;;  %vm1042_vm4 = vweird.f32 %v966_v17 }
 0x21e   : > { %v871_v24 = vpop.xlane.xlu0 %870 }
 0x21f   : > { %v935_v27 = vmul.f32 %v2021_v23, %v2021_v23  ;;  %v919_v1 = vmul.f32 0.00390625, %v871_v24 }
 0x221   : > { %v951_v9 = vsub.f32 %v919_v1, %v935_v27 }
 0x222   : > { %1316 = vperm.xlu1 %1553, %v1313_v2  }
 0x223   : > { %v1556_v10 = vpop.eup %1555  ;;  %v967_v59 = vadd.f32 1e-05, %v951_v9 }
 0x224   : > { %v1037_v33 = vmul.f32 %v1556_v10, %v966_v17  ;;  %v794_v38 = vpop.xlane.xlu2 %793  ;;  %vm1043_vm3 = vweird.f32 %v1556_v10 }
 0x225   : > { %v2025_v60 = vmul.f32 0.00390625, %v794_v38  ;;  %1557 = vrsqrt.f32 %v967_v59  ;;  %vm1044_vm5 = vmor %vm1042_vm4, %vm1043_vm3  ;;  %vm1052_vm7 = vweird.f32 %v967_v59 }
 0x226   : > { %v1038_v63 = vmul.f32 %v1556_v10, %v1037_v33  ;;  %v874_v0 = vpop.xlane.xlu1 %873 }
 0x227   : > { %v920_v61 = vmul.f32 0.00390625, %v874_v0  ;;  %v936_v62 = vmul.f32 %v2025_v60, %v2025_v60 }
 0x228   : > { %v1039_v36 = vmul.f32 0.5, %v1038_v63 }
 0x229   : > { %v952_v42 = vsub.f32 %v920_v61, %v936_v62 }
 0x22a   : > { %v1040_v41 = vsub.f32 1.5, %v1039_v36 }
 0x22b   : > { %v2033_v5 = vadd.f32 1e-05, %v952_v42  ;;  %v1558_v57 = vpop.eup %1557 }
 0x22c   : > { %v797_v45 = vpop.xlane.xlu0 %796  ;;  %v1041_v48 = vmul.f32 %v1556_v10, %v1040_v41  ;;  %v1047_v27 = vmul.f32 %v1558_v57, %v967_v59  ;;  %vm1053_vm6 = vweird.f32 %v1558_v57  ;;  %v1150_v59 = vsub.f32 %v1851_v25, %v2021_v23 }
 0x22d   : > { %v2029_v49 = vmul.f32 0.00390625, %v797_v45  ;;  %1559 = vrsqrt.f32 %v2033_v5  ;;  %vm1054_vm8 = vmor %vm1052_vm7, %vm1053_vm6  ;;  %vm1062_vm9 = vweird.f32 %v2033_v5 }
 0x22e   : > { %v877_v6 = vpop.xlane.xlu2 %876  ;;  %v1045_v56 = vsel %vm1044_vm5, %v1556_v10, %v1041_v48  ;;  %v1048_v1 = vmul.f32 %v1558_v57, %v1047_v27 }
 0x22f   : > { %v921_v58 = vmul.f32 0.00390625, %v877_v6  ;;  %v937_v13 = vmul.f32 %v2029_v49, %v2029_v49  ;;  %v2037_v14 = vmul.f32 %v1148_v3, %v1045_v56  ;;  %v2039_v17 = vmul.f32 %v1149_v50, %v1045_v56 }
 0x230   : > { %v1049_v63 = vmul.f32 0.5, %v1048_v1 }
 0x231   : > { %v953_v24 = vsub.f32 %v921_v58, %v937_v13  ;;  %vm1212_vm11 = vcmp.ge.f32.partialorder %v2037_v14, 0.0  ;;  %vm1213_vm12 = vcmp.ge.f32.partialorder %v2039_v17, 0.0 }
 0x232   : > { %v1050_v42 = vsub.f32 1.5, %v1049_v63 }
 0x233   : > { %v2042_v15 = vadd.f32 1e-05, %v953_v24  ;;  %v2049_v33 = vpop.eup %1559 }
 0x234   : > { %v800_v16 = vpop.xlane.xlu1 %799  ;;  %v1057_v0 = vmul.f32 %v2049_v33, %v2033_v5  ;;  %v1051_v58 = vmul.f32 %v1558_v57, %v1050_v42  ;;  %vm1063_vm10 = vweird.f32 %v2049_v33  ;;  %v1155_v5 = vsub.f32 %v1873_v44, %v2029_v49 }
 0x235   : > { %v2044_v55 = vmul.f32 0.00390625, %v800_v16  ;;  %1561 = vrsqrt.f32 %v2042_v15  ;;  %vm1064_vm13 = vmor %vm1062_vm9, %vm1063_vm10  ;;  %vm1072_vm0 = vweird.f32 %v2042_v15 }
 0x236   : > { %v880_v2 = vpop.xlane.xlu0 %879  ;;  %v1058_v48 = vmul.f32 %v2049_v33, %v1057_v0 }
 0x237   : > { %v938_v9 = vmul.f32 %v2044_v55, %v2044_v55  ;;  %v922_v10 = vmul.f32 0.00390625, %v880_v2 }
 0x238   : > { %v1059_v13 = vmul.f32 0.5, %v1058_v48 }
 0x239   : > { %v954_v38 = vsub.f32 %v922_v10, %v938_v9  ;;  %v1055_v10 = vsel %vm1054_vm8, %v1558_v57, %v1051_v58  ;;  %v1153_v57 = vsub.f32 %v1863_v37, %v2025_v60  ;;  %v1244_v37 = vmul.f32 0.2, %v2037_v14 }
 0x23b   : > { %v2053_v61 = vadd.f32 1e-05, %v954_v38  ;;  %v2055_v36 = vpop.eup %1561  ;;  %v1060_v38 = vsub.f32 1.5, %v1059_v13  ;;  %v1245_v13 = vmul.f32 0.2, %v2039_v17 }
 0x23c   : > { %v803_v62 = vpop.xlane.xlu2 %802  ;;  %v1067_v6 = vmul.f32 %v2055_v36, %v2042_v15  ;;  %vm1073_vm15 = vweird.f32 %v2055_v36  ;;  %v1156_v15 = vsub.f32 %v1881_v51, %v2044_v55 }
 0x23d   : > { %v2057_v41 = vmul.f32 0.00390625, %v803_v62  ;;  %1563 = vrsqrt.f32 %v2053_v61  ;;  %v2126_v44 = vsel %vm1213_vm12, %v2039_v17, %v1245_v13  ;;  %vm1074_vm1 = vmor %vm1072_vm0, %vm1073_vm15  ;;  %vm1082_vm3 = vweird.f32 %v2053_v61 }
 0x23e   : > { %v883_v45 = vpop.xlane.xlu1 %882  ;;  %v1068_v16 = vmul.f32 %v2055_v36, %v1067_v6 }
 0x23f   : > { %v923_v3 = vmul.f32 0.00390625, %v883_v45  ;;  %v939_v50 = vmul.f32 %v2057_v41, %v2057_v41  ;;  %v1151_v45 = vsub.f32 %v1853_v26, %v2021_v23  ;;  %v1061_v26 = vmul.f32 %v2049_v33, %v1060_v38 }
 0x240   : > { %v1069_v42 = vmul.f32 0.5, %v1068_v16 }
 0x241   : > { %v955_v56 = vsub.f32 %v923_v3, %v939_v50  ;;  %v1152_v3 = vsub.f32 %v1861_v34, %v2025_v60  ;;  %v1182_v50 = vmul.f32 %v1150_v59, %v1055_v10  ;;  %v1183_v38 = vmul.f32 %v1151_v45, %v1055_v10 }
 0x242   : > { %v1070_v23 = vsub.f32 1.5, %v1069_v42  ;;  %v1065_v59 = vsel %vm1064_vm13, %v2049_v33, %v1061_v26  ;;  %v1154_v42 = vsub.f32 %v1871_v43, %v2029_v49 }
 0x243   : > { %v2065_v24 = vadd.f32 1e-05, %v955_v56  ;;  %v2067_v27 = vpop.eup %1563  ;;  %vm1214_vm14 = vcmp.ge.f32.partialorder %v1182_v50, 0.0  ;;  %v1184_v33 = vmul.f32 %v1152_v3, %v1065_v59  ;;  %v1247_v43 = vmul.f32 0.2, %v1183_v38 }
 0x244   : > { %v806_v1 = vpop.xlane.xlu0 %805  ;;  %v1077_v63 = vmul.f32 %v2067_v27, %v2053_v61  ;;  %vm1215_vm2 = vcmp.ge.f32.partialorder %v1183_v38, 0.0  ;;  %v1185_v17 = vmul.f32 %v1153_v57, %v1065_v59  ;;  %vm1083_vm5 = vweird.f32 %v2067_v27 }
 0x245   : > { %1565 = vrsqrt.f32 %v2065_v24  ;;  %v2071_v2 = vmul.f32 0.00390625, %v806_v1  ;;  %vm1216_vm4 = vcmp.ge.f32.partialorder %v1184_v33, 0.0  ;;  %vm1084_vm8 = vmor %vm1082_vm3, %vm1083_vm5  ;;  %vm1092_vm9 = vweird.f32 %v2065_v24 }
 0x246   : > { %v886_v9 = vpop.xlane.xlu2 %885  ;;  %v1078_v25 = vmul.f32 %v2067_v27, %v1077_v63  ;;  %vm1217_vm7 = vcmp.ge.f32.partialorder %v1185_v17, 0.0 }
 0x247   : > { %v924_v0 = vmul.f32 0.00390625, %v886_v9  ;;  %v940_v62 = vmul.f32 %v2071_v2, %v2071_v2  ;;  %v1246_v9 = vmul.f32 0.2, %v1182_v50 }
 0x248   : > { %v1079_v63 = vmul.f32 0.5, %v1078_v25  ;;  %v2118_v25 = vsel %vm1212_vm11, %v2037_v14, %v1244_v37  ;;  %v1157_v14 = vsub.f32 %v1883_v52, %v2044_v55  ;;  %v1248_v52 = vmul.f32 0.2, %v1184_v33 }
 0x249   : > { %v956_v48 = vsub.f32 %v924_v0, %v940_v62  ;;  %v2121_v26 = vsel %vm1214_vm14, %v1182_v50, %v1246_v9  ;;  %v2144_v55 = vsel %vm1215_vm2, %v1183_v38, %v1247_v43 }
 0x24b   : > { %v2086_v6 = vpop.eup %1565  ;;  %v2090_v56 = vadd.f32 1e-05, %v956_v48  ;;  %v1071_v48 = vmul.f32 %v2055_v36, %v1070_v23  ;;  %v1080_v23 = vsub.f32 1.5, %v1079_v63  ;;  %v1249_v63 = vmul.f32 0.2, %v1185_v17 }
 0x24c   : > { %v1087_v34 = vmul.f32 %v2086_v6, %v2065_v24  ;;  %v809_v58 = vpop.xlane.xlu1 %808  ;;  %vm1093_vm6 = vweird.f32 %v2086_v6 }
 0x24d   : > { %1567 = vrsqrt.f32 %v2090_v56  ;;  %v2098_v60 = vmul.f32 0.00390625, %v809_v58  ;;  %v1075_v50 = vsel %vm1074_vm1, %v2055_v36, %v1071_v48  ;;  %v1081_v57 = vmul.f32 %v2067_v27, %v1080_v23  ;;  %vm1094_vm10 = vmor %vm1092_vm9, %vm1093_vm6 }
 0x24e   : > { %v1088_v16 = vmul.f32 %v2086_v6, %v1087_v34  ;;  %v889_v1 = vpop.xlane.xlu0 %888  ;;  %v1187_v9 = vmul.f32 %v1155_v5, %v1075_v50  ;;  %v1158_v48 = vsub.f32 %v1891_v11, %v2057_v41  ;;  %v2161_v5 = vsel %vm1216_vm4, %v1184_v33, %v1248_v52 }
 0x24f   : > { %v941_v0 = vmul.f32 %v2098_v60, %v2098_v60  ;;  %v925_v62 = vmul.f32 0.00390625, %v889_v1  ;;  %v1186_v1 = vmul.f32 %v1154_v42, %v1075_v50  ;;  %v1159_v42 = vsub.f32 %v1893_v12, %v2057_v41 }
 0x250   : > { %v1089_v10 = vmul.f32 0.5, %v1088_v16  ;;  %v1085_v61 = vsel %vm1084_vm8, %v2067_v27, %v1081_v57  ;;  %v1251_v41 = vmul.f32 0.2, %v1187_v9  ;;  %v2174_v33 = vsel %vm1217_vm7, %v1185_v17, %v1249_v63 }
 0x251   : > { %v957_v45 = vsub.f32 %v925_v62, %v941_v0  ;;  %v1250_v23 = vmul.f32 0.2, %v1186_v1  ;;  %vm1218_vm11 = vcmp.ge.f32.partialorder %v1186_v1, 0.0  ;;  %v1188_v52 = vmul.f32 %v1156_v15, %v1085_v61 }
 0x252   : > { %v1090_v58 = vsub.f32 1.5, %v1089_v10  ;;  %vm1219_vm12 = vcmp.ge.f32.partialorder %v1187_v9, 0.0  ;;  %v1161_v17 = vsub.f32 %v1905_v8, %v2071_v2  ;;  %vm1102_vm13 = vweird.f32 %v2090_v56 }
 0x253   : > { %v2128_v49 = vpop.eup %1567  ;;  %v2132_v34 = vadd.f32 1e-05, %v957_v45  ;;  %v2190_v63 = vsel %vm1218_vm11, %v1186_v1, %v1250_v23  ;;  %v1162_v1 = vsub.f32 %v1914_v31, %v2098_v60  ;;  %vm1220_vm15 = vcmp.ge.f32.partialorder %v1188_v52, 0.0 }
 0x254   : > { %v1097_v3 = vmul.f32 %v2128_v49, %v2090_v56  ;;  %v1091_v38 = vmul.f32 %v2086_v6, %v1090_v58  ;;  %v1160_v58 = vsub.f32 %v1902_v22, %v2071_v2  ;;  %vm1103_vm14 = vweird.f32 %v2128_v49 }
 0x255   : > { %1569 = vrsqrt.f32 %v2132_v34  ;;  %v1252_v2 = vmul.f32 0.2, %v1188_v52  ;;  %vm1104_vm0 = vmor %vm1102_vm13, %vm1103_vm14  ;;  %vm1112_vm5 = vweird.f32 %v2132_v34 }
 0x256   : > { %v1098_v37 = vmul.f32 %v2128_v49, %v1097_v3  ;;  %v892_v13 = vpop.xlane.xlu2 %891  ;;  %v812_v16 = vpop.xlane.xlu0 %811  ;;  %v1095_v27 = vsel %vm1094_vm10, %v2086_v6, %v1091_v38 }
 0x257   : > { %v2147_v36 = vmul.f32 0.00390625, %v812_v16  ;;  %v926_v62 = vmul.f32 0.00390625, %v892_v13  ;;  %v1190_v22 = vmul.f32 %v1158_v48, %v1095_v27  ;;  %v1191_v38 = vmul.f32 %v1159_v42, %v1095_v27 }
 0x258   : > { %v1099_v0 = vmul.f32 0.5, %v1098_v37  ;;  %v2212_v27 = vsel %vm1220_vm15, %v1188_v52, %v1252_v2 }
 0x259   : > { %v942_v59 = vmul.f32 %v2147_v36, %v2147_v36  ;;  %vm1222_vm2 = vcmp.ge.f32.partialorder %v1190_v22, 0.0  ;;  %vm1223_vm4 = vcmp.ge.f32.partialorder %v1191_v38, 0.0  ;;  %v1164_v10 = vsub.f32 %v1926_v40, %v2147_v36 }
 0x25a   : > { %v1100_v3 = vsub.f32 1.5, %v1099_v0 }
 0x25b   : > { %v2165_v45 = vpop.eup %1569  ;;  %v958_v43 = vsub.f32 %v926_v62, %v942_v59  ;;  %v1189_v62 = vmul.f32 %v1157_v14, %v1085_v61  ;;  %v2195_v59 = vsel %vm1219_vm12, %v1187_v9, %v1251_v41  ;;  %v1163_v14 = vsub.f32 %v1917_v4, %v2098_v60 }
 0x25c   : > { %v1107_v11 = vmul.f32 %v2165_v45, %v2132_v34  ;;  %v815_v12 = vpop.xlane.xlu1 %814  ;;  %v1101_v15 = vmul.f32 %v2128_v49, %v1100_v3  ;;  %v1254_v9 = vmul.f32 0.2, %v1190_v22  ;;  %vm1113_vm3 = vweird.f32 %v2165_v45 }
 0x25d   : > { %v2176_v50 = vadd.f32 1e-05, %v958_v43  ;;  %v2178_v24 = vmul.f32 0.00390625, %v815_v12  ;;  %vm1221_vm1 = vcmp.ge.f32.partialorder %v1189_v62, 0.0  ;;  %v1253_v31 = vmul.f32 0.2, %v1189_v62  ;;  %vm1114_vm6 = vmor %vm1112_vm5, %vm1113_vm3 }
 0x25e   : > { %v1108_v37 = vmul.f32 %v2165_v45, %v1107_v11  ;;  %v895_v13 = vpop.xlane.xlu2 %894  ;;  %v862_v16 = vpop.xlane.xlu0 %861  ;;  %v1105_v12 = vsel %vm1104_vm0, %v2128_v49, %v1101_v15 }
 0x25f   : > { %1571 = vrsqrt.f32 %v2176_v50  ;;  %v943_v57 = vmul.f32 %v2178_v24, %v2178_v24  ;;  %v927_v0 = vmul.f32 0.00390625, %v895_v13  ;;  %v916_v13 = vmul.f32 0.00390625, %v862_v16 }
 0x260   : > { %v1109_v6 = vmul.f32 0.5, %v1108_v37  ;;  %v1255_v37 = vmul.f32 0.2, %v1191_v38  ;;  %v1192_v15 = vmul.f32 %v1160_v58, %v1105_v12  ;;  %v2224_v2 = vsel %vm1221_vm1, %v1189_v62, %v1253_v31 }
 0x261   : > { %v959_v8 = vsub.f32 %v927_v0, %v943_v57  ;;  %v1193_v58 = vmul.f32 %v1161_v17, %v1105_v12  ;;  %vm1122_vm7 = vweird.f32 %v2176_v50 }
 0x262   : > { %v1110_v48 = vsub.f32 1.5, %v1109_v6  ;;  %v1256_v40 = vmul.f32 0.2, %v1192_v15  ;;  %vm1224_vm9 = vcmp.ge.f32.partialorder %v1192_v15, 0.0 }
 0x263   : > { %v2203_v56 = vadd.f32 1e-05, %v959_v8  ;;  %v2218_v8 = vsel %vm1222_vm2, %v1190_v22, %v1254_v9  ;;  %vm1225_vm11 = vcmp.ge.f32.partialorder %v1193_v58, 0.0 }
 0x264   : > { %v782_v61 = vpop.xlane.xlu1 %781  ;;  %v1111_v6 = vmul.f32 %v2165_v45, %v1110_v48  ;;  %v1165_v48 = vsub.f32 %v1929_v7, %v2147_v36 }
 0x265   : > { %v1572_v23 = vpop.eup %1571  ;;  %v2207_v11 = vmul.f32 0.00390625, %v782_v61  ;;  %1573 = vrsqrt.f32 %v2203_v56  ;;  %vm1132_vm14 = vweird.f32 %v2203_v56 }
 0x266   : > { %v1117_v41 = vmul.f32 %v1572_v23, %v2176_v50  ;;  %v785_v3 = vpop.xlane.xlu2 %784  ;;  %v779_v49 = vpop.xlane.xlu0 %778  ;;  %v1115_v9 = vsel %vm1114_vm6, %v2165_v45, %v1111_v6  ;;  %vm1123_vm8 = vweird.f32 %v1572_v23  ;;  %v1166_v6 = vsub.f32 %v1944_v53, %v2178_v24 }
 0x267   : > { %v932_v57 = vmul.f32 %v2207_v11, %v2207_v11  ;;  %v2221_v52 = vmul.f32 0.00390625, %v785_v3  ;;  %v1194_v12 = vmul.f32 %v1162_v1, %v1115_v9  ;;  %vm1124_vm10 = vmor %vm1122_vm7, %vm1123_vm8  ;;  %v2259_v53 = vmul.f32 %v1163_v14, %v1115_v9 }
 0x268   : > { %v1118_v0 = vmul.f32 %v1572_v23, %v1117_v41  ;;  %v2235_v41 = vsel %vm1223_vm4, %v1191_v38, %v1255_v37  ;;  %v1257_v38 = vmul.f32 0.2, %v1193_v58 }
 0x269   : > { %v948_v61 = vsub.f32 %v916_v13, %v932_v57  ;;  %v933_v7 = vmul.f32 %v2221_v52, %v2221_v52  ;;  %vm1226_vm13 = vcmp.ge.f32.partialorder %v1194_v12, 0.0  ;;  %vm1227_vm0 = vcmp.ge.f32.partialorder %v2259_v53, 0.0 }
 0x26a   : > { %v1119_v16 = vmul.f32 0.5, %v1118_v0  ;;  %v1167_v0 = vsub.f32 %v1947_v54, %v2178_v24  ;;  %v2261_v51 = vsel %vm1225_vm11, %v1193_v58, %v1257_v38 }
 0x26b   : > { %v2230_v22 = vadd.f32 1e-05, %v948_v61  ;;  %v1574_v62 = vpop.eup %1573  ;;  %v2248_v61 = vmul.f32 0.00390625, %v779_v49 }
 0x26c   : > { %v865_v31 = vpop.xlane.xlu1 %864  ;;  %v1120_v3 = vsub.f32 1.5, %v1119_v16  ;;  %v1127_v13 = vmul.f32 %v1574_v62, %v2203_v56  ;;  %vm1133_vm12 = vweird.f32 %v1574_v62 }
 0x26d   : > { %1575 = vrsqrt.f32 %v2230_v22  ;;  %v917_v36 = vmul.f32 0.00390625, %v865_v31  ;;  %v931_v60 = vmul.f32 %v2248_v61, %v2248_v61  ;;  %vm1134_vm15 = vmor %vm1132_vm14, %vm1133_vm12  ;;  %vm1022_vm6 = vweird.f32 %v2230_v22 }
 0x26e   : > { %v776_v45 = vpop.xlane.xlu2 %775  ;;  %v1121_v17 = vmul.f32 %v1572_v23, %v1120_v3  ;;  %v1128_v37 = vmul.f32 %v1574_v62, %v1127_v13  ;;  %v2254_v13 = vsel %vm1224_vm9, %v1192_v15, %v1256_v40  ;;  %v1144_v15 = vsub.f32 %v1936_v46, %v2207_v11 }
 0x26f   : > { %v949_v57 = vsub.f32 %v917_v36, %v933_v7  ;;  %v2252_v3 = vmul.f32 0.00390625, %v776_v45  ;;  %v770_v7 = vpop.xlane.xlu0 %769  ;;  %v1258_v36 = vmul.f32 0.2, %v1194_v12 }
 0x270   : > { %v1125_v16 = vsel %vm1124_vm10, %v1572_v23, %v1121_v17  ;;  %v1129_v31 = vmul.f32 0.5, %v1128_v37  ;;  %v2277_v56 = vmul.f32 0.00390625, %v770_v7  ;;  %v1259_v7 = vmul.f32 0.2, %v2259_v53 }
 0x271   : > { %v2250_v1 = vadd.f32 1e-05, %v949_v57  ;;  %v1196_v23 = vmul.f32 %v1164_v10, %v1125_v16  ;;  %v930_v58 = vmul.f32 %v2252_v3, %v2252_v3  ;;  %v1197_v40 = vmul.f32 %v1165_v48, %v1125_v16 }
 0x272   : > { %v1130_v24 = vsub.f32 1.5, %v1129_v31  ;;  %v1290_v17 = vsel %vm1226_vm13, %v1194_v12, %v1258_v36 }
 0x273   : > { %v2263_v54 = vpop.eup %1575  ;;  %1577 = vrsqrt.f32 %v2250_v1  ;;  %v1260_v31 = vmul.f32 0.2, %v1196_v23  ;;  %vm1228_vm1 = vcmp.ge.f32.partialorder %v1196_v23, 0.0  ;;  %vm1229_vm3 = vcmp.ge.f32.partialorder %v1197_v40, 0.0 }
 0x274   : > { %v1017_v49 = vmul.f32 %v2263_v54, %v2230_v22  ;;  %v856_v4 = vpop.xlane.xlu1 %855  ;;  %v1131_v9 = vmul.f32 %v1574_v62, %v1130_v24  ;;  %vm1023_vm5 = vweird.f32 %v2263_v54  ;;  %vm1032_vm9 = vweird.f32 %v2250_v1 }
 0x275   : > { %v914_v14 = vmul.f32 0.00390625, %v856_v4  ;;  %vm1024_vm8 = vmor %vm1022_vm6, %vm1023_vm5 }
 0x276   : > { %v1018_v10 = vmul.f32 %v2263_v54, %v1017_v49  ;;  %v859_v45 = vpop.xlane.xlu2 %858  ;;  %v1135_v57 = vsel %vm1134_vm15, %v1574_v62, %v1131_v9  ;;  %v1261_v49 = vmul.f32 0.2, %v1197_v40 }
 0x277   : > { %v946_v38 = vsub.f32 %v914_v14, %v930_v58  ;;  %v915_v37 = vmul.f32 0.00390625, %v859_v45  ;;  %v1198_v42 = vmul.f32 %v1166_v6, %v1135_v57  ;;  %v1199_v43 = vmul.f32 %v1167_v0, %v1135_v57  ;;  %v853_v14 = vpop.xlane.xlu0 %852 }
 0x278   : > { %v1019_v4 = vmul.f32 0.5, %v1018_v10  ;;  %v1292_v6 = vsel %vm1228_vm1, %v1196_v23, %v1260_v31  ;;  %v913_v23 = vmul.f32 0.00390625, %v853_v14 }
 0x279   : > { %v2280_v24 = vpop.eup %1577  ;;  %v2282_v48 = vadd.f32 1e-05, %v946_v38  ;;  %v947_v16 = vsub.f32 %v915_v37, %v931_v60  ;;  %vm1230_vm2 = vcmp.ge.f32.partialorder %v1198_v42, 0.0  ;;  %v1262_v36 = vmul.f32 0.2, %v1198_v42 }
 0x27a   : > { %v1027_v12 = vmul.f32 %v2280_v24, %v2250_v1  ;;  %vm1231_vm4 = vcmp.ge.f32.partialorder %v1199_v43, 0.0  ;;  %v1263_v9 = vmul.f32 0.2, %v1199_v43  ;;  %v1020_v10 = vsub.f32 1.5, %v1019_v4 }
 0x27b   : > { %1579 = vrsqrt.f32 %v2282_v48  ;;  %v2288_v62 = vadd.f32 1e-05, %v947_v16  ;;  %v1294_v60 = vsel %vm1230_vm2, %v1198_v42, %v1262_v36  ;;  %v1293_v37 = vsel %vm1229_vm3, %v1197_v40, %v1261_v49 }
 0x27c   : > { %v1028_v0 = vmul.f32 %v2280_v24, %v1027_v12  ;;  %v773_v58 = vpop.xlane.xlu1 %772  ;;  %v1311_v38 = vpack.c.bf16 %v1294_v60, %v1292_v6  ;;  %v1295_v50 = vsel %vm1231_vm4, %v1199_v43, %v1263_v9  ;;  %v1021_v16 = vmul.f32 %v2263_v54, %v1020_v10 }
 0x27d   : > { %1581 = vrsqrt.f32 %v2288_v62  ;;  %v2292_v45 = vmul.f32 0.00390625, %v773_v58  ;;  %v1312_v42 = vpack.c.bf16 %v1295_v50, %v1293_v37  ;;  %v928_v40 = vmul.f32 %v2277_v56, %v2277_v56 }
 0x27e   : > { %v1029_v57 = vmul.f32 0.5, %v1028_v0  ;;  %v850_v34 = vpop.xlane.xlu2 %849  ;;  %1320 = vmatpush.bf16.msrb.mxu0 %v1311_v38  ;;  %v1291_v43 = vsel %vm1227_vm0, %v2259_v53, %v1259_v7  ;;  %v1145_v36 = vsub.f32 %v1939_v47, %v2207_v11  ;;  %vm1033_vm7 = vweird.f32 %v2280_v24 }
 0x27f   : > { %v929_v31 = vmul.f32 %v2292_v45, %v2292_v45  ;;  %v912_v12 = vmul.f32 0.00390625, %v850_v34  ;;  %1333 = vmatpush.bf16.msrb.mxu1 %v1312_v42  ;;  %v1309_v50 = vpack.c.bf16 %v1290_v17, %v2254_v13  ;;  %v1025_v0 = vsel %vm1024_vm8, %v2263_v54, %v1021_v16  ;;  %vm1034_vm10 = vmor %vm1032_vm9, %vm1033_vm7 }
 0x280   : > { %v1030_v4 = vsub.f32 1.5, %v1029_v57  ;;  %v1146_v47 = vsub.f32 %v1966_v20, %v2221_v52  ;;  %v1310_v13 = vpack.c.bf16 %v1291_v43, %v2261_v51  ;;  %v1147_v17 = vsub.f32 %v1969_v21, %v2221_v52 }
 0x281   : > { %v1580_v49 = vpop.eup %1579  ;;  %v945_v6 = vsub.f32 %v913_v23, %v929_v31  ;;  %v944_v34 = vsub.f32 %v912_v12, %v928_v40  ;;  %v1142_v20 = vsub.f32 %v1960_v18, %v2248_v61  ;;  %v1176_v21 = vmul.f32 %v1144_v15, %v1025_v0 }
 0x282   : > { %v997_v22 = vmul.f32 %v1580_v49, %v2282_v48  ;;  %v1031_v53 = vmul.f32 %v2280_v24, %v1030_v4  ;;  %1321 = vmatpush.bf16.msrb.mxu0 %v1309_v50  ;;  %v1177_v9 = vmul.f32 %v1145_v36, %v1025_v0  ;;  %v1143_v10 = vsub.f32 %v1963_v19, %v2248_v61 }
 0x283   : > { %v2313_v7 = vpop.eup %1581  ;;  %v2318_v14 = vadd.f32 1e-05, %v945_v6  ;;  %v2327_v60 = vadd.f32 1e-05, %v944_v34  ;;  %1334 = vmatpush.bf16.msrb.mxu1 %v1310_v13  ;;  %v1140_v18 = vsub.f32 %v1988_v30, %v2252_v3  ;;  %v2415_v38 = vpack.c.bf16 %v2218_v8, %v2212_v27 }
 0x284   : > { %v998_v54 = vmul.f32 %v1580_v49, %v997_v22  ;;  %v1007_v58 = vmul.f32 %v2313_v7, %v2288_v62  ;;  %v1035_v51 = vsel %vm1034_vm10, %v2280_v24, %v1031_v53  ;;  %vm1002_vm11 = vweird.f32 %v2282_v48 }
 0x285   : > { %1583 = vrsqrt.f32 %v2318_v14  ;;  %v1178_v24 = vmul.f32 %v1146_v47, %v1035_v51  ;;  %v1179_v37 = vmul.f32 %v1147_v17, %v1035_v51  ;;  %vm1003_vm12 = vweird.f32 %v1580_v49 }
 0x286   : > { %v999_v52 = vmul.f32 0.5, %v998_v54  ;;  %v1008_v1 = vmul.f32 %v2313_v7, %v1007_v58  ;;  %1585 = vrsqrt.f32 %v2327_v60  ;;  %1322 = vmatpush.bf16.msrb.mxu0 %v2415_v38  ;;  %v2416_v15 = vpack.c.bf16 %v2235_v41, %v2224_v2  ;;  %vm1004_vm15 = vmor %vm1002_vm11, %vm1003_vm12 }
 0x287   : > { %vm1210_vm13 = vcmp.ge.f32.partialorder %v1178_v24, 0.0  ;;  %v1242_v19 = vmul.f32 0.2, %v1178_v24  ;;  %vm1211_vm14 = vcmp.ge.f32.partialorder %v1179_v37, 0.0  ;;  %v1243_v61 = vmul.f32 0.2, %v1179_v37 }
 0x288   : > { %v1000_v46 = vsub.f32 1.5, %v999_v52  ;;  %v1009_v11 = vmul.f32 0.5, %v1008_v1  ;;  %1335 = vmatpush.bf16.msrb.mxu1 %v2416_v15  ;;  %v1240_v57 = vmul.f32 0.2, %v1176_v21  ;;  %v1241_v16 = vmul.f32 0.2, %v1177_v9 }
 0x289   : > { %v1141_v23 = vsub.f32 %v1991_v32, %v2252_v3  ;;  %vm1013_vm0 = vweird.f32 %v2313_v7  ;;  %v2417_v2 = vpack.c.bf16 %v2190_v63, %v2161_v5  ;;  %vm1208_vm1 = vcmp.ge.f32.partialorder %v1176_v21, 0.0 }
 0x28a   : > { %v1010_v30 = vsub.f32 1.5, %v1009_v11  ;;  %v1001_v27 = vmul.f32 %v1580_v49, %v1000_v46  ;;  %vm1209_vm2 = vcmp.ge.f32.partialorder %v1177_v9, 0.0  ;;  %v1274_v31 = vsel %vm1210_vm13, %v1178_v24, %v1242_v19 }
 0x28b   : > { %v2349_v8 = vpop.eup %1583  ;;  %1323 = vmatpush.bf16.msrb.mxu0 %v2417_v2  ;;  %v1275_v42 = vsel %vm1211_vm14, %v1179_v37, %v1243_v61  ;;  %vm1012_vm3 = vweird.f32 %v2288_v62  ;;  %v2418_v3 = vpack.c.bf16 %v2195_v59, %v2174_v33  ;;  %v1272_v40 = vsel %vm1208_vm1, %v1176_v21, %v1240_v57 }
 0x28c   : > { %v1586_v41 = vpop.eup %1585  ;;  %v987_v48 = vmul.f32 %v2349_v8, %v2318_v14  ;;  %v1005_v4 = vsel %vm1004_vm15, %v1580_v49, %v1001_v27  ;;  %v1011_v5 = vmul.f32 %v2313_v7, %v1010_v30  ;;  %vm1014_vm4 = vmor %vm1012_vm3, %vm1013_vm0  ;;  %v1273_v43 = vsel %vm1209_vm2, %v1177_v9, %v1241_v16  ;;  %v1296_v30 = vld [vmem:[%s2412_s5] sm:$0x1] }
 0x28d   : > { %v977_v32 = vmul.f32 %v1586_v41, %v2327_v60  ;;  %1336 = vmatpush.bf16.msrb.mxu1 %v2418_v3  ;;  %v1172_v63 = vmul.f32 %v1140_v18, %v1005_v4  ;;  %v1173_v36 = vmul.f32 %v1141_v23, %v1005_v4  ;;  %v2419_v49 = vpack.c.bf16 %v2121_v26, %v2118_v25 }
 0x28e   : > { %v988_v12 = vmul.f32 %v2349_v8, %v987_v48  ;;  %v1301_v62 = vpack.c.bf16 %v1274_v31, %v1272_v40  ;;  %v1302_v50 = vpack.c.bf16 %v1275_v42, %v1273_v43  ;;  %v1015_v22 = vsel %vm1014_vm4, %v2313_v7, %v1011_v5 }
 0x28f   : > { %v978_v6 = vmul.f32 %v1586_v41, %v977_v32  ;;  %1324 = vmatpush.bf16.msrb.mxu0 %v2419_v49  ;;  %v1174_v59 = vmul.f32 %v1142_v20, %v1015_v22  ;;  %v1236_v34 = vmul.f32 0.2, %v1172_v63  ;;  %v1175_v0 = vmul.f32 %v1143_v10, %v1015_v22 }
 0x290   : > { %v989_v33 = vmul.f32 0.5, %v988_v12  ;;  %v2420_v47 = vpack.c.bf16 %v2144_v55, %v2126_v44  ;;  %vm1204_vm5 = vcmp.ge.f32.partialorder %v1172_v63, 0.0  ;;  %vm1205_vm6 = vcmp.ge.f32.partialorder %v1173_v36, 0.0 }
 0x291   : > { %v979_v53 = vmul.f32 0.5, %v978_v6  ;;  %v1237_v13 = vmul.f32 0.2, %v1173_v36  ;;  %vm1206_vm7 = vcmp.ge.f32.partialorder %v1174_v59, 0.0  ;;  %v1238_v17 = vmul.f32 0.2, %v1174_v59 }
 0x292   : > { %1337 = vmatpush.bf16.msrb.mxu1 %v2420_v47  ;;  %vm1207_vm8 = vcmp.ge.f32.partialorder %v1175_v0, 0.0  ;;  %v1239_v25 = vmul.f32 0.2, %v1175_v0  ;;  %vm983_vm9 = vweird.f32 %v1586_v41  ;;  %v990_v7 = vsub.f32 1.5, %v989_v33 }
 0x293   : > { %v980_v26 = vsub.f32 1.5, %v979_v53  ;;  %1325 = vmatpush.bf16.msrb.mxu0 %v1301_v62  ;;  %vm993_vm10 = vweird.f32 %v2349_v8  ;;  %v1268_v54 = vsel %vm1204_vm5, %v1172_v63, %v1236_v34  ;;  %v1270_v58 = vsel %vm1206_vm7, %v1174_v59, %v1238_v17 }
 0x294   : > { %v1269_v20 = vsel %vm1205_vm6, %v1173_v36, %v1237_v13  ;;  %v1271_v51 = vsel %vm1207_vm8, %v1175_v0, %v1239_v25  ;;  %vm982_vm11 = vweird.f32 %v2327_v60  ;;  %v1299_v44 = vpack.c.bf16 %v1270_v58, %v1268_v54  ;;  %v1317_v57 = vpop.permute.xlu1 %1316 }
 0x295   : > { %v981_v21 = vmul.f32 %v1586_v41, %v980_v26  ;;  %v1300_v55 = vpack.c.bf16 %v1271_v51, %v1269_v20  ;;  %v1136_v52 = vsub.f32 %v1982_v28, %v2277_v56  ;;  %v1137_v1 = vsub.f32 %v1985_v29, %v2277_v56  ;;  %vm984_vm12 = vmor %vm982_vm11, %vm983_vm9 }
 0x296   : > { %1338 = vmatpush.bf16.msrb.mxu1 %v1302_v50  ;;  %v991_v9 = vmul.f32 %v2349_v8, %v990_v7  ;;  %vm992_vm13 = vweird.f32 %v2318_v14  ;;  %v1138_v10 = vsub.f32 %v1994_v39, %v2292_v45  ;;  %v1139_v60 = vsub.f32 %v1997_v35, %v2292_v45 }
 0x297   : > { %1326 = vmatpush.bf16.msrb.mxu0 %v1299_v44  ;;  %v985_v18 = vsel %vm984_vm12, %v1586_v41, %v981_v21  ;;  %vm994_vm14 = vmor %vm992_vm13, %vm993_vm10  ;;  %v1319_v16 = vperm.slane %v1317_v57, 0  ;;  %v1390_v17 = vlaneseq  ;;  %vm1387_vm10 = vcmask 1040384  }
 0x298   : > { %v995_v28 = vsel %vm994_vm14, %v2349_v8, %v991_v9  ;;  %v1168_v29 = vmul.f32 %v1136_v52, %v985_v18  ;;  %v1169_v56 = vmul.f32 %v1137_v1, %v985_v18 }
 0x299   : > { %v1170_v38 = vmul.f32 %v1138_v10, %v995_v28  ;;  %v1171_v24 = vmul.f32 %v1139_v60, %v995_v28  ;;  %vm1392_vm12 = vcmp.lt.s32.totalorder %v1390_v17, 256 }
 0x29a   : > { %1339 = vmatpush.bf16.msrb.mxu1 %v1300_v55  ;;  %vm1200_vm15 = vcmp.ge.f32.partialorder %v1168_v29, 0.0  ;;  %v1232_v14 = vmul.f32 0.2, %v1168_v29  ;;  %vm1201_vm0 = vcmp.ge.f32.partialorder %v1169_v56, 0.0  ;;  %v1233_v37 = vmul.f32 0.2, %v1169_v56 }
 0x29b   : > { %vm1202_vm1 = vcmp.ge.f32.partialorder %v1170_v38, 0.0  ;;  %v1234_v39 = vmul.f32 0.2, %v1170_v38  ;;  %vm1203_vm2 = vcmp.ge.f32.partialorder %v1171_v24, 0.0  ;;  %v1235_v35 = vmul.f32 0.2, %v1171_v24 }
 0x29c   : > { %v1264_v45 = vsel %vm1200_vm15, %v1168_v29, %v1232_v14  ;;  %v1265_v46 = vsel %vm1201_vm0, %v1169_v56, %v1233_v37 }
 0x29d   : > { %v1266_v11 = vsel %vm1202_vm1, %v1170_v38, %v1234_v39  ;;  %v1267_v15 = vsel %vm1203_vm2, %v1171_v24, %v1235_v35 }
 0x29e   : > { %v1297_v19 = vpack.c.bf16 %v1266_v11, %v1264_v45  ;;  %v1298_v61 = vpack.c.bf16 %v1267_v15, %v1265_v46 }
 0x2a0   : > { %1327 = vmatpush.bf16.msrb.mxu0 %v1297_v19  ;;  %1340 = vmatpush.bf16.msrb.mxu1 %v1298_v61 }
 0x2a3   : > { %1328 = vmatmul.bf16.vlgmr.msrb.gmra.mxu0 %v1296_v30  ;;  %1341 = vmatmul.bf16.vlgmr.msrb.gmra.mxu1 %v1296_v30 }
 0x320   : > { %v1329_v27 = vpop.f32.mrf.mxu0  ;;  %v1342_v8 = vpop.f32.mrf.mxu1 }
 0x321   : > { %v1330_v23 = vadd.f32 %v1329_v27, %v1319_v16  ;;  %v1343_v2 = vadd.f32 %v1342_v8, %v1319_v16 }
 0x323   : > { %v1346_v41 = vsub.f32 0.0, %v1330_v23  ;;  %v1347_v48 = vsub.f32 0.0, %v1343_v2 }
 0x325   : > { %v1348_v31 = vmul.f32 1.442695, %v1346_v41  ;;  %v1350_v42 = vmul.f32 1.442695, %v1347_v48 }
 0x327   : > { %1587 = vpow2.f32 %v1348_v31 }
 0x328   : > { %1589 = vpow2.f32 %v1350_v42  ;;  %v1344_v4 = vpop.f32.mrf.mxu1  ;;  %v1331_v32 = vpop.f32.mrf.mxu0 }
 0x32d   : > { %v1588_v3 = vpop.eup %1587 }
 0x32e   : > { %v1590_v5 = vpop.eup %1589  ;;  %v1352_v63 = vadd.f32 1.0, %v1588_v3 }
 0x32f   : > { %v1353_v12 = vadd.f32 1.0, %v1590_v5 }
 0x330   : > { %1591 = vrcp.f32 %v1352_v63  ;;  %vm1359_vm5 = vweird.f32 %v1352_v63  ;;  %v1365_v0 = vand.u32 2147483648, %v1352_v63  ;;  %v1363_v47 = vand.u32 2147483647, %v1352_v63 }
 0x331   : > { %1593 = vrcp.f32 %v1353_v12  ;;  %v1380_v22 = vand.u32 2147483648, %v1353_v12  ;;  %v1378_v59 = vand.u32 2147483647, %v1353_v12  ;;  %vm1374_vm7 = vweird.f32 %v1353_v12 }
 0x332   : > { %v1366_v54 = vor.u32 1.1754944e-38, %v1365_v0  ;;  %vm1364_vm11 = vcmp.eq.f32.partialorder %v1363_v47, 8.507059e+37 }
 0x333   : > { %v1381_v25 = vor.u32 1.1754944e-38, %v1380_v22  ;;  %vm1379_vm9 = vcmp.eq.f32.partialorder %v1378_v59, 8.507059e+37 }
 0x336   : > { %v1592_v40 = vpop.eup %1591 }
 0x337   : > { %v1594_v43 = vpop.eup %1593  ;;  %v1355_v36 = vmul.f32 %v1592_v40, %v1352_v63  ;;  %vm1360_vm3 = vweird.f32 %v1592_v40 }
 0x338   : > { %v1370_v6 = vmul.f32 %v1594_v43, %v1353_v12  ;;  %vm1375_vm4 = vweird.f32 %v1594_v43  ;;  %vm2394_vm6 = vmor %vm1359_vm5, %vm1360_vm3 }
 0x339   : > { %v1356_v49 = vsub.f32 1.0, %v1355_v36  ;;  %vm1376_vm8 = vmor %vm1374_vm7, %vm1375_vm4 }
 0x33a   : > { %v1371_v62 = vsub.f32 1.0, %v1370_v6 }
 0x33b   : > { %v1357_v50 = vmul.f32 %v1592_v40, %v1356_v49 }
 0x33c   : > { %v1372_v33 = vmul.f32 %v1594_v43, %v1371_v62 }
 0x33d   : > { %v1358_v34 = vadd.f32 %v1592_v40, %v1357_v50 }
 0x33e   : > { %v1373_v13 = vadd.f32 %v1594_v43, %v1372_v33 }
 0x33f   : > { %v1362_v26 = vsel %vm2394_vm6, %v1592_v40, %v1358_v34 }
 0x340   : > { %v1377_v7 = vsel %vm1376_vm8, %v1594_v43, %v1373_v13  ;;  %v1367_v51 = vsel %vm1364_vm11, %v1366_v54, %v1362_v26 }
 0x341   : > { %v1382_v58 = vsel %vm1379_vm9, %v1381_v25, %v1377_v7 }
 0x342   : > { %v1386_v20 = vrot.slane %v1382_v58, 7 }
 0x344   : > { %v1388_v21 = vsel %vm1387_vm10, %v1367_v51, %v1386_v20 }
 0x345   : > { %1394 = vst.msk [vmem:[%s278_s19] sm:$0x3] %vm1392_vm12, %v1388_v21 }
 0x346 PF: > { %s19_s26 = sadd.s32 1, %s1601_s26  }
 0x347   : > { %p16_p4 = scmp.ge.s32.totalorder %s19_s26, 4  }
 0x349   :  { %18 = sbr.rel (!%p16_p4) target bundleno = 3 (0x3), region = 78 }

</bundles_post_ra>
